<compile_context>
chip_gen: v5e
topology: v5e:2x2
jax: 0.10.0
libtpu: 0.0.40
codegen_flags: <defaults>
</compile_context>

<pallas_src>
import jax
import jax.numpy as jnp
from jax import lax
from jax.experimental import pallas as pl
from jax.experimental.pallas import tpu as pltpu

# ----------------------------- config (small) -----------------------------
VOCAB = 64
HIDDEN = 32
NUM_HEADS = 4
HEAD_DIM = HIDDEN // NUM_HEADS
INTERMEDIATE = 64
NUM_LAYERS = 2
MAX_POS = 16
OUT_DIM = 128          # nn.Linear(hidden_size, 128)
BATCH = 2
SEQ = 8
LN_EPS = 1e-12

# Lane offsets inside the packed per-layer matrix slab [wvo | wqk | w1].
_WVO_OFF = 0
_WQK_OFF = NUM_HEADS * HIDDEN            # 128 (lane-aligned)
_W1_OFF = _WQK_OFF + 2 * HIDDEN          # 192
_MAT_W = _W1_OFF + INTERMEDIATE          # 256


# ----------------------------- fused kernel -------------------------------
def _layernorm(x, g, b):
    mean = jnp.mean(x, axis=-1, keepdims=True)
    # single-pass variance, clamped so rsqrt never sees a negative value
    var = jnp.maximum(jnp.mean(x * x, axis=-1, keepdims=True) - mean * mean, 0.0)
    return (x - mean) * lax.rsqrt(var + LN_EPS) * g + b


def _fused_bert_dssm_kernel(ids_ref, mask_ref, emb_ref, mat_ref, w2_ref,
                            vec_ref, headw_ref, headv_ref, out_ref):
    B, S, H, NH, D, I = BATCH, SEQ, HIDDEN, NUM_HEADS, HEAD_DIM, INTERMEDIATE
    BS = B * S
    f32 = jnp.float32

    hv = headv_ref[...]                                   # (4, 128) misc vectors

    # --- embeddings: gather via one-hot matmul + (pos+type) + LayerNorm ---
    ids = ids_ref[...]                                    # (BS, 1) int32
    iota = lax.broadcasted_iota(jnp.int32, (BS, VOCAB), 1)
    onehot = jnp.where(iota == ids, 1.0, 0.0)             # (BS, VOCAB) f32
    emb = jnp.dot(onehot, emb_ref[0:VOCAB, :], preferred_element_type=f32)
    emb = emb + emb_ref[VOCAB:VOCAB + BS, :]              # pre-tiled pos+type rows
    x = _layernorm(emb, hv[0:1, :H], hv[1:2, :H])         # (BS, H)

    # combined additive mask (BS, BS): key padding (-1e4) within a batch,
    # -1e9 across batches (batch folded into sublanes). Built in the wrapper,
    # added once per head (broadcast hoisted out of all loops).
    add_mask = mask_ref[...]                              # (BS, BS)

    # --- transformer encoder layers (static unroll, everything in vregs) ---
    for l in range(NUM_LAYERS):
        mat = mat_ref[l]                                  # (H, 256) = [wvo | wqk | w1]
        vl = vec_ref[l]                                   # (8, 128) bias / LN rows

        # one fused projection: [per-head (wv@wo) | q*1/sqrt(d) | k]
        proj = jnp.dot(x, mat[:, :_W1_OFF], preferred_element_type=f32)   # (BS, 192)
        vo = proj[:, :_WQK_OFF]                           # (BS, NH*H), no bias needed
        qk = proj[:, _WQK_OFF:] + vl[0:1, :2 * H]         # (BS, 2H), scale folded in q

        attn = jnp.zeros((BS, H), f32)
        for h in range(NH):
            q = qk[:, h * D:(h + 1) * D]                  # (BS, D)
            k = qk[:, H + h * D:H + (h + 1) * D]          # (BS, D)
            s = lax.dot_general(q, k, (((1,), (1,)), ((), ())),
                                preferred_element_type=f32)           # (BS, BS)
            s = s + add_mask
            p = jnp.exp(s - jnp.max(s, axis=-1, keepdims=True))
            p = p / jnp.sum(p, axis=-1, keepdims=True)    # exact divide
            # wv@wo folded at pack time: P @ vo_h is context + output projection
            attn = attn + jnp.dot(p, vo[:, h * H:(h + 1) * H],
                                  preferred_element_type=f32)
        attn = attn + vl[1:2, :H]                         # folded bias: bv@wo + bo
        x = _layernorm(attn + x, vl[2:3, :H], vl[3:4, :H])

        # FFN
        h1 = jnp.dot(x, mat[:, _W1_OFF:], preferred_element_type=f32) + vl[4:5, :I]
        # TODO(synk): HF/PyTorch BERT default is exact (erf) GELU; tanh approx used here.
        h1 = jax.nn.gelu(h1, approximate=True)
        h2 = jnp.dot(h1, w2_ref[l], preferred_element_type=f32) + vl[5:6, :H]
        x = _layernorm(h2 + x, vl[6:7, :H], vl[7:8, :H])

    # --- pooler (dense + tanh) on CLS rows only, DSSM fc (dense + ReLU) ---
    cls = jnp.concatenate([x[b * S:b * S + 1, :] for b in range(B)], axis=0)   # (B, H)
    hw = headw_ref[...]                                   # (H, OUT_DIM + H) = [fc_w | pool_w]
    pooled = jnp.tanh(jnp.dot(cls, hw[:, OUT_DIM:], preferred_element_type=f32)
                      + hv[2:3, :H])
    embed = jnp.maximum(jnp.dot(pooled, hw[:, :OUT_DIM], preferred_element_type=f32)
                        + hv[3:4, :OUT_DIM], 0.0)
    out_ref[...] = embed                                  # one lane-dense (B,128) store


# ----------------------------- parameter init -----------------------------
def _normal(key, shape, scale=0.02):
    return (scale * jax.random.normal(key, shape)).astype(jnp.float32)


def init_params(key):
    keys = iter(jax.random.split(key, 64))
    params = {
        "word_emb": _normal(next(keys), (VOCAB, HIDDEN)),
        "pos_emb": _normal(next(keys), (MAX_POS, HIDDEN)),
        "type_emb": _normal(next(keys), (2, HIDDEN)),
        "emb_ln_g": jnp.ones((HIDDEN,), jnp.float32),
        "emb_ln_b": jnp.zeros((HIDDEN,), jnp.float32),
        "layers": [],
        "pool_w": _normal(next(keys), (HIDDEN, HIDDEN)),
        "pool_b": jnp.zeros((HIDDEN,), jnp.float32),
        "fc_w": _normal(next(keys), (HIDDEN, OUT_DIM)),
        "fc_b": jnp.zeros((OUT_DIM,), jnp.float32),
    }
    for _ in range(NUM_LAYERS):
        params["layers"].append({
            "wq": _normal(next(keys), (HIDDEN, HIDDEN)),
            "bq": jnp.zeros((HIDDEN,), jnp.float32),
            "wk": _normal(next(keys), (HIDDEN, HIDDEN)),
            "bk": jnp.zeros((HIDDEN,), jnp.float32),
            "wv": _normal(next(keys), (HIDDEN, HIDDEN)),
            "bv": jnp.zeros((HIDDEN,), jnp.float32),
            "wo": _normal(next(keys), (HIDDEN, HIDDEN)),
            "bo": jnp.zeros((HIDDEN,), jnp.float32),
            "ln1_g": jnp.ones((HIDDEN,), jnp.float32),
            "ln1_b": jnp.zeros((HIDDEN,), jnp.float32),
            "w1": _normal(next(keys), (HIDDEN, INTERMEDIATE)),
            "b1": jnp.zeros((INTERMEDIATE,), jnp.float32),
            "w2": _normal(next(keys), (INTERMEDIATE, HIDDEN)),
            "b2": jnp.zeros((HIDDEN,), jnp.float32),
            "ln2_g": jnp.ones((HIDDEN,), jnp.float32),
            "ln2_b": jnp.zeros((HIDDEN,), jnp.float32),
        })
    return params


def _row(v):
    v = jnp.asarray(v, jnp.float32)
    return jnp.pad(v, (0, 128 - v.shape[0])).reshape(1, 128)


def pack_params(params):
    """One-time (outside the jit'd call path) weight packing into a few VMEM slabs."""
    H, D, NH = HIDDEN, HEAD_DIM, NUM_HEADS
    scale = 1.0 / (D ** 0.5)
    mats, vecs, w2s = [], [], []
    for lyr in params["layers"]:
        # per-head wv@wo fold -> lane-dense (H, NH*H)
        wvo = jnp.concatenate(
            [lyr["wv"][:, h * D:(h + 1) * D] @ lyr["wo"][h * D:(h + 1) * D, :]
             for h in range(NH)], axis=1)
        wqk = jnp.concatenate([lyr["wq"] * scale, lyr["wk"]], axis=1)       # (H, 2H)
        mats.append(jnp.concatenate([wvo, wqk, lyr["w1"]], axis=1))         # (H, 256)
        bqk = jnp.concatenate([lyr["bq"] * scale, lyr["bk"]])               # (2H,)
        attn_bias = lyr["bv"] @ lyr["wo"] + lyr["bo"]                       # (H,)
        vecs.append(jnp.concatenate(
            [_row(bqk), _row(attn_bias), _row(lyr["ln1_g"]), _row(lyr["ln1_b"]),
             _row(lyr["b1"]), _row(lyr["b2"]), _row(lyr["ln2_g"]), _row(lyr["ln2_b"])],
            axis=0))                                                         # (8, 128)
        w2s.append(lyr["w2"])
    # TODO(synk): token_type_ids assumed all-zero (type_emb[0]), matching the reference call.
    pos_type = params["pos_emb"][:SEQ] + params["type_emb"][0][None, :]      # (S, H)
    emb_slab = jnp.concatenate(
        [params["word_emb"], jnp.tile(pos_type, (BATCH, 1))], axis=0)        # (V+BS, H)
    head_w = jnp.concatenate([params["fc_w"], params["pool_w"]], axis=1)     # (H, 160)
    head_vec = jnp.concatenate(
        [_row(params["emb_ln_g"]), _row(params["emb_ln_b"]),
         _row(params["pool_b"]), _row(params["fc_b"])], axis=0)              # (4, 128)
    return dict(emb_slab=emb_slab,
                mat_slab=jnp.stack(mats),    # (L, 32, 256)
                w2_slab=jnp.stack(w2s),      # (L, 64, 32)
                vec_slab=jnp.stack(vecs),    # (L, 8, 128)
                head_w=head_w,               # (32, 160)
                head_vec=head_vec)           # (4, 128)


# ----------------------------- forward pass -------------------------------
@jax.jit
def bert_dssm_forward(packed, input_ids, attention_mask):
    B, S = input_ids.shape
    BS = B * S

    ids2 = input_ids.reshape(BS, 1).astype(jnp.int32)
    # additive mask: HF-style key padding within each batch, -1e9 across batches
    ext = (1.0 - attention_mask.astype(jnp.float32)) * jnp.float32(-1e4)     # (B, S)
    key = jnp.tile(ext.reshape(1, BS), (BS, 1))                              # (BS, BS)
    rb = jnp.arange(BS) // S
    add_mask = jnp.where(rb[:, None] == rb[None, :], key, jnp.float32(-1e9))

    args = (ids2, add_mask, packed["emb_slab"], packed["mat_slab"],
            packed["w2_slab"], packed["vec_slab"], packed["head_w"],
            packed["head_vec"])
    vmem = pl.BlockSpec(memory_space=pltpu.MemorySpace.VMEM)
    return pl.pallas_call(
        _fused_bert_dssm_kernel,
        out_shape=jax.ShapeDtypeStruct((B, OUT_DIM), jnp.float32),
        in_specs=[vmem] * len(args),
        out_specs=vmem,
    )(*args)


# ----------------------------------- main ----------------------------------
if __name__ == "__main__":
    key = jax.random.PRNGKey(0)
    params = init_params(key)
    packed = pack_params(params)   # once, outside the per-call jit path

    input_ids = jax.random.randint(
        jax.random.fold_in(key, 1), (BATCH, SEQ), 0, VOCAB, dtype=jnp.int32)
    attention_mask = jnp.ones((BATCH, SEQ), dtype=jnp.int32).at[1, -2:].set(0)

    out = bert_dssm_forward(packed, input_ids, attention_mask)
    out = jax.block_until_ready(out)

    assert out.shape == (BATCH, OUT_DIM), out.shape
    assert out.dtype == jnp.float32
    assert bool(jnp.all(out >= 0.0))      # ReLU output is non-negative
    assert bool(jnp.all(jnp.isfinite(out)))
    print("KERNEL_OK")
</pallas_src>

<mosaic_0001>
module attributes {stable_mosaic.version = 11 : i64} {
  func.func @_fused_bert_dssm_kernel(%arg0: memref<16x1xi32, #tpu.memory_space<vmem>>, %arg1: memref<16x16xf32, #tpu.memory_space<vmem>>, %arg2: memref<80x32xf32, #tpu.memory_space<vmem>>, %arg3: memref<2x32x256xf32, #tpu.memory_space<vmem>>, %arg4: memref<2x64x32xf32, #tpu.memory_space<vmem>>, %arg5: memref<2x8x128xf32, #tpu.memory_space<vmem>>, %arg6: memref<32x160xf32, #tpu.memory_space<vmem>>, %arg7: memref<4x128xf32, #tpu.memory_space<vmem>>, %arg8: memref<2x128xf32, #tpu.memory_space<vmem>>) attributes {dimension_semantics = [], scalar_prefetch = 0 : i64, scratch_operands = 0 : i64, tpu.core_type = #tpu.core_type<tc>} {
    %c0 = arith.constant 0 : index
    %c0_0 = arith.constant 0 : index
    %0 = vector.load %arg7[%c0, %c0_0] : memref<4x128xf32, #tpu.memory_space<vmem>>, vector<4x128xf32>
    %c0_1 = arith.constant 0 : index
    %c0_2 = arith.constant 0 : index
    %1 = vector.load %arg0[%c0_1, %c0_2] : memref<16x1xi32, #tpu.memory_space<vmem>>, vector<16x1xi32>
    %2 = tpu.iota {dimensions = array<i32: 1>} : vector<16x64xi32>
    %3 = vector.broadcast %1 : vector<16x1xi32> to vector<16x64xi32>
    %4 = arith.cmpi eq, %2, %3 : vector<16x64xi32>
    %cst = arith.constant 1.000000e+00 : f32
    %cst_3 = arith.constant 0.000000e+00 : f32
    %5 = vector.broadcast %cst : f32 to vector<16x64xf32>
    %6 = vector.broadcast %cst_3 : f32 to vector<16x64xf32>
    %7 = arith.select %4, %5, %6 : vector<16x64xi1>, vector<16x64xf32>
    %c0_4 = arith.constant 0 : index
    %c0_5 = arith.constant 0 : index
    %8 = vector.load %arg2[%c0_4, %c0_5] : memref<80x32xf32, #tpu.memory_space<vmem>>, vector<64x32xf32>
    %cst_6 = arith.constant dense<0.000000e+00> : vector<16x32xf32>
    %9 = tpu.matmul %7, %8, %cst_6 {dimension_numbers = #tpu.dot_dimension_numbers<[1], [0], [0], [1], [0, 0, 1, 1], [], []>} : vector<16x64xf32>, vector<64x32xf32>, vector<16x32xf32> -> vector<16x32xf32>
    %c64 = arith.constant 64 : index
    %c0_7 = arith.constant 0 : index
    %10 = vector.load %arg2[%c64, %c0_7] : memref<80x32xf32, #tpu.memory_space<vmem>>, vector<16x32xf32>
    %11 = arith.addf %9, %10 : vector<16x32xf32>
    %12 = vector.extract_strided_slice %0 {offsets = [0, 0], sizes = [1, 32], strides = [1, 1]} : vector<4x128xf32> to vector<1x32xf32>
    %13 = vector.extract_strided_slice %0 {offsets = [1, 0], sizes = [1, 32], strides = [1, 1]} : vector<4x128xf32> to vector<1x32xf32>
    %cst_8 = arith.constant dense<0.000000e+00> : vector<16xf32>
    %14 = vector.multi_reduction <add>, %11, %cst_8 [1] : vector<16x32xf32> to vector<16xf32>
    %15 = vector.shape_cast %14 : vector<16xf32> to vector<16x1xf32>
    %cst_9 = arith.constant 3.200000e+01 : f32
    %16 = vector.broadcast %cst_9 : f32 to vector<16x1xf32>
    %17 = arith.divf %15, %16 : vector<16x1xf32>
    %18 = arith.mulf %11, %11 : vector<16x32xf32>
    %cst_10 = arith.constant dense<0.000000e+00> : vector<16xf32>
    %19 = vector.multi_reduction <add>, %18, %cst_10 [1] : vector<16x32xf32> to vector<16xf32>
    %20 = vector.shape_cast %19 : vector<16xf32> to vector<16x1xf32>
    %cst_11 = arith.constant 3.200000e+01 : f32
    %21 = vector.broadcast %cst_11 : f32 to vector<16x1xf32>
    %22 = arith.divf %20, %21 : vector<16x1xf32>
    %23 = arith.mulf %17, %17 : vector<16x1xf32>
    %24 = arith.subf %22, %23 : vector<16x1xf32>
    %cst_12 = arith.constant 0.000000e+00 : f32
    %25 = vector.broadcast %cst_12 : f32 to vector<16x1xf32>
    %26 = arith.maximumf %24, %25 : vector<16x1xf32>
    %27 = vector.broadcast %17 : vector<16x1xf32> to vector<16x32xf32>
    %28 = arith.subf %11, %27 : vector<16x32xf32>
    %cst_13 = arith.constant 9.99999996E-13 : f32
    %29 = vector.broadcast %cst_13 : f32 to vector<16x1xf32>
    %30 = arith.addf %26, %29 : vector<16x1xf32>
    %31 = math.rsqrt %30 : vector<16x1xf32>
    %32 = vector.broadcast %31 : vector<16x1xf32> to vector<16x32xf32>
    %33 = arith.mulf %28, %32 : vector<16x32xf32>
    %34 = vector.broadcast %12 : vector<1x32xf32> to vector<16x32xf32>
    %35 = arith.mulf %33, %34 : vector<16x32xf32>
    %36 = vector.broadcast %13 : vector<1x32xf32> to vector<16x32xf32>
    %37 = arith.addf %35, %36 : vector<16x32xf32>
    %c0_14 = arith.constant 0 : index
    %c0_15 = arith.constant 0 : index
    %38 = vector.load %arg1[%c0_14, %c0_15] : memref<16x16xf32, #tpu.memory_space<vmem>>, vector<16x16xf32>
    %c0_16 = arith.constant 0 : index
    %c0_17 = arith.constant 0 : index
    %c0_18 = arith.constant 0 : index
    %39 = vector.load %arg3[%c0_16, %c0_17, %c0_18] : memref<2x32x256xf32, #tpu.memory_space<vmem>>, vector<1x32x256xf32>
    %40 = vector.shape_cast %39 : vector<1x32x256xf32> to vector<32x256xf32>
    %c0_19 = arith.constant 0 : index
    %c0_20 = arith.constant 0 : index
    %c0_21 = arith.constant 0 : index
    %41 = vector.load %arg5[%c0_19, %c0_20, %c0_21] : memref<2x8x128xf32, #tpu.memory_space<vmem>>, vector<1x8x128xf32>
    %42 = vector.shape_cast %41 : vector<1x8x128xf32> to vector<8x128xf32>
    %43 = vector.extract_strided_slice %40 {offsets = [0, 0], sizes = [32, 192], strides = [1, 1]} : vector<32x256xf32> to vector<32x192xf32>
    %cst_22 = arith.constant dense<0.000000e+00> : vector<16x192xf32>
    %44 = tpu.matmul %37, %43, %cst_22 {dimension_numbers = #tpu.dot_dimension_numbers<[1], [0], [0], [1], [0, 0, 1, 1], [], []>} : vector<16x32xf32>, vector<32x192xf32>, vector<16x192xf32> -> vector<16x192xf32>
    %45 = vector.extract_strided_slice %44 {offsets = [0, 0], sizes = [16, 128], strides = [1, 1]} : vector<16x192xf32> to vector<16x128xf32>
    %46 = vector.extract_strided_slice %44 {offsets = [0, 128], sizes = [16, 64], strides = [1, 1]} : vector<16x192xf32> to vector<16x64xf32>
    %47 = vector.extract_strided_slice %42 {offsets = [0, 0], sizes = [1, 64], strides = [1, 1]} : vector<8x128xf32> to vector<1x64xf32>
    %48 = vector.broadcast %47 : vector<1x64xf32> to vector<16x64xf32>
    %49 = arith.addf %46, %48 : vector<16x64xf32>
    %cst_23 = arith.constant 0.000000e+00 : f32
    %50 = vector.broadcast %cst_23 : f32 to vector<16x32xf32>
    %51 = vector.extract_strided_slice %49 {offsets = [0, 0], sizes = [16, 8], strides = [1, 1]} : vector<16x64xf32> to vector<16x8xf32>
    %52 = vector.extract_strided_slice %49 {offsets = [0, 32], sizes = [16, 8], strides = [1, 1]} : vector<16x64xf32> to vector<16x8xf32>
    %cst_24 = arith.constant dense<0.000000e+00> : vector<16x16xf32>
    %53 = tpu.matmul %51, %52, %cst_24 {dimension_numbers = #tpu.dot_dimension_numbers<[1], [1], [0], [0], [0, 0, 1, 0], [], []>} : vector<16x8xf32>, vector<16x8xf32>, vector<16x16xf32> -> vector<16x16xf32>
    %54 = arith.addf %53, %38 : vector<16x16xf32>
    %cst_25 = arith.constant dense<0xFF800000> : vector<16xf32>
    %55 = vector.multi_reduction <maximumf>, %54, %cst_25 [1] : vector<16x16xf32> to vector<16xf32>
    %56 = vector.shape_cast %55 : vector<16xf32> to vector<16x1xf32>
    %57 = vector.broadcast %56 : vector<16x1xf32> to vector<16x16xf32>
    %58 = arith.subf %54, %57 : vector<16x16xf32>
    %59 = math.exp %58 : vector<16x16xf32>
    %cst_26 = arith.constant dense<0.000000e+00> : vector<16xf32>
    %60 = vector.multi_reduction <add>, %59, %cst_26 [1] : vector<16x16xf32> to vector<16xf32>
    %61 = vector.shape_cast %60 : vector<16xf32> to vector<16x1xf32>
    %62 = vector.broadcast %61 : vector<16x1xf32> to vector<16x16xf32>
    %63 = arith.divf %59, %62 : vector<16x16xf32>
    %64 = vector.extract_strided_slice %45 {offsets = [0, 0], sizes = [16, 32], strides = [1, 1]} : vector<16x128xf32> to vector<16x32xf32>
    %cst_27 = arith.constant dense<0.000000e+00> : vector<16x32xf32>
    %65 = tpu.matmul %63, %64, %cst_27 {dimension_numbers = #tpu.dot_dimension_numbers<[1], [0], [0], [1], [0, 0, 1, 1], [], []>} : vector<16x16xf32>, vector<16x32xf32>, vector<16x32xf32> -> vector<16x32xf32>
    %66 = arith.addf %50, %65 : vector<16x32xf32>
    %67 = vector.extract_strided_slice %49 {offsets = [0, 8], sizes = [16, 8], strides = [1, 1]} : vector<16x64xf32> to vector<16x8xf32>
    %68 = vector.extract_strided_slice %49 {offsets = [0, 40], sizes = [16, 8], strides = [1, 1]} : vector<16x64xf32> to vector<16x8xf32>
    %cst_28 = arith.constant dense<0.000000e+00> : vector<16x16xf32>
    %69 = tpu.matmul %67, %68, %cst_28 {dimension_numbers = #tpu.dot_dimension_numbers<[1], [1], [0], [0], [0, 0, 1, 0], [], []>} : vector<16x8xf32>, vector<16x8xf32>, vector<16x16xf32> -> vector<16x16xf32>
    %70 = arith.addf %69, %38 : vector<16x16xf32>
    %cst_29 = arith.constant dense<0xFF800000> : vector<16xf32>
    %71 = vector.multi_reduction <maximumf>, %70, %cst_29 [1] : vector<16x16xf32> to vector<16xf32>
    %72 = vector.shape_cast %71 : vector<16xf32> to vector<16x1xf32>
    %73 = vector.broadcast %72 : vector<16x1xf32> to vector<16x16xf32>
    %74 = arith.subf %70, %73 : vector<16x16xf32>
    %75 = math.exp %74 : vector<16x16xf32>
    %cst_30 = arith.constant dense<0.000000e+00> : vector<16xf32>
    %76 = vector.multi_reduction <add>, %75, %cst_30 [1] : vector<16x16xf32> to vector<16xf32>
    %77 = vector.shape_cast %76 : vector<16xf32> to vector<16x1xf32>
    %78 = vector.broadcast %77 : vector<16x1xf32> to vector<16x16xf32>
    %79 = arith.divf %75, %78 : vector<16x16xf32>
    %80 = vector.extract_strided_slice %45 {offsets = [0, 32], sizes = [16, 32], strides = [1, 1]} : vector<16x128xf32> to vector<16x32xf32>
    %cst_31 = arith.constant dense<0.000000e+00> : vector<16x32xf32>
    %81 = tpu.matmul %79, %80, %cst_31 {dimension_numbers = #tpu.dot_dimension_numbers<[1], [0], [0], [1], [0, 0, 1, 1], [], []>} : vector<16x16xf32>, vector<16x32xf32>, vector<16x32xf32> -> vector<16x32xf32>
    %82 = arith.addf %66, %81 : vector<16x32xf32>
    %83 = vector.extract_strided_slice %49 {offsets = [0, 16], sizes = [16, 8], strides = [1, 1]} : vector<16x64xf32> to vector<16x8xf32>
    %84 = vector.extract_strided_slice %49 {offsets = [0, 48], sizes = [16, 8], strides = [1, 1]} : vector<16x64xf32> to vector<16x8xf32>
    %cst_32 = arith.constant dense<0.000000e+00> : vector<16x16xf32>
    %85 = tpu.matmul %83, %84, %cst_32 {dimension_numbers = #tpu.dot_dimension_numbers<[1], [1], [0], [0], [0, 0, 1, 0], [], []>} : vector<16x8xf32>, vector<16x8xf32>, vector<16x16xf32> -> vector<16x16xf32>
    %86 = arith.addf %85, %38 : vector<16x16xf32>
    %cst_33 = arith.constant dense<0xFF800000> : vector<16xf32>
    %87 = vector.multi_reduction <maximumf>, %86, %cst_33 [1] : vector<16x16xf32> to vector<16xf32>
    %88 = vector.shape_cast %87 : vector<16xf32> to vector<16x1xf32>
    %89 = vector.broadcast %88 : vector<16x1xf32> to vector<16x16xf32>
    %90 = arith.subf %86, %89 : vector<16x16xf32>
    %91 = math.exp %90 : vector<16x16xf32>
    %cst_34 = arith.constant dense<0.000000e+00> : vector<16xf32>
    %92 = vector.multi_reduction <add>, %91, %cst_34 [1] : vector<16x16xf32> to vector<16xf32>
    %93 = vector.shape_cast %92 : vector<16xf32> to vector<16x1xf32>
    %94 = vector.broadcast %93 : vector<16x1xf32> to vector<16x16xf32>
    %95 = arith.divf %91, %94 : vector<16x16xf32>
    %96 = vector.extract_strided_slice %45 {offsets = [0, 64], sizes = [16, 32], strides = [1, 1]} : vector<16x128xf32> to vector<16x32xf32>
    %cst_35 = arith.constant dense<0.000000e+00> : vector<16x32xf32>
    %97 = tpu.matmul %95, %96, %cst_35 {dimension_numbers = #tpu.dot_dimension_numbers<[1], [0], [0], [1], [0, 0, 1, 1], [], []>} : vector<16x16xf32>, vector<16x32xf32>, vector<16x32xf32> -> vector<16x32xf32>
    %98 = arith.addf %82, %97 : vector<16x32xf32>
    %99 = vector.extract_strided_slice %49 {offsets = [0, 24], sizes = [16, 8], strides = [1, 1]} : vector<16x64xf32> to vector<16x8xf32>
    %100 = vector.extract_strided_slice %49 {offsets = [0, 56], sizes = [16, 8], strides = [1, 1]} : vector<16x64xf32> to vector<16x8xf32>
    %cst_36 = arith.constant dense<0.000000e+00> : vector<16x16xf32>
    %101 = tpu.matmul %99, %100, %cst_36 {dimension_numbers = #tpu.dot_dimension_numbers<[1], [1], [0], [0], [0, 0, 1, 0], [], []>} : vector<16x8xf32>, vector<16x8xf32>, vector<16x16xf32> -> vector<16x16xf32>
    %102 = arith.addf %101, %38 : vector<16x16xf32>
    %cst_37 = arith.constant dense<0xFF800000> : vector<16xf32>
    %103 = vector.multi_reduction <maximumf>, %102, %cst_37 [1] : vector<16x16xf32> to vector<16xf32>
    %104 = vector.shape_cast %103 : vector<16xf32> to vector<16x1xf32>
    %105 = vector.broadcast %104 : vector<16x1xf32> to vector<16x16xf32>
    %106 = arith.subf %102, %105 : vector<16x16xf32>
    %107 = math.exp %106 : vector<16x16xf32>
    %cst_38 = arith.constant dense<0.000000e+00> : vector<16xf32>
    %108 = vector.multi_reduction <add>, %107, %cst_38 [1] : vector<16x16xf32> to vector<16xf32>
    %109 = vector.shape_cast %108 : vector<16xf32> to vector<16x1xf32>
    %110 = vector.broadcast %109 : vector<16x1xf32> to vector<16x16xf32>
    %111 = arith.divf %107, %110 : vector<16x16xf32>
    %112 = vector.extract_strided_slice %45 {offsets = [0, 96], sizes = [16, 32], strides = [1, 1]} : vector<16x128xf32> to vector<16x32xf32>
    %cst_39 = arith.constant dense<0.000000e+00> : vector<16x32xf32>
    %113 = tpu.matmul %111, %112, %cst_39 {dimension_numbers = #tpu.dot_dimension_numbers<[1], [0], [0], [1], [0, 0, 1, 1], [], []>} : vector<16x16xf32>, vector<16x32xf32>, vector<16x32xf32> -> vector<16x32xf32>
    %114 = arith.addf %98, %113 : vector<16x32xf32>
    %115 = vector.extract_strided_slice %42 {offsets = [1, 0], sizes = [1, 32], strides = [1, 1]} : vector<8x128xf32> to vector<1x32xf32>
    %116 = vector.broadcast %115 : vector<1x32xf32> to vector<16x32xf32>
    %117 = arith.addf %114, %116 : vector<16x32xf32>
    %118 = arith.addf %117, %37 : vector<16x32xf32>
    %119 = vector.extract_strided_slice %42 {offsets = [2, 0], sizes = [1, 32], strides = [1, 1]} : vector<8x128xf32> to vector<1x32xf32>
    %120 = vector.extract_strided_slice %42 {offsets = [3, 0], sizes = [1, 32], strides = [1, 1]} : vector<8x128xf32> to vector<1x32xf32>
    %cst_40 = arith.constant dense<0.000000e+00> : vector<16xf32>
    %121 = vector.multi_reduction <add>, %118, %cst_40 [1] : vector<16x32xf32> to vector<16xf32>
    %122 = vector.shape_cast %121 : vector<16xf32> to vector<16x1xf32>
    %cst_41 = arith.constant 3.200000e+01 : f32
    %123 = vector.broadcast %cst_41 : f32 to vector<16x1xf32>
    %124 = arith.divf %122, %123 : vector<16x1xf32>
    %125 = arith.mulf %118, %118 : vector<16x32xf32>
    %cst_42 = arith.constant dense<0.000000e+00> : vector<16xf32>
    %126 = vector.multi_reduction <add>, %125, %cst_42 [1] : vector<16x32xf32> to vector<16xf32>
    %127 = vector.shape_cast %126 : vector<16xf32> to vector<16x1xf32>
    %cst_43 = arith.constant 3.200000e+01 : f32
    %128 = vector.broadcast %cst_43 : f32 to vector<16x1xf32>
    %129 = arith.divf %127, %128 : vector<16x1xf32>
    %130 = arith.mulf %124, %124 : vector<16x1xf32>
    %131 = arith.subf %129, %130 : vector<16x1xf32>
    %cst_44 = arith.constant 0.000000e+00 : f32
    %132 = vector.broadcast %cst_44 : f32 to vector<16x1xf32>
    %133 = arith.maximumf %131, %132 : vector<16x1xf32>
    %134 = vector.broadcast %124 : vector<16x1xf32> to vector<16x32xf32>
    %135 = arith.subf %118, %134 : vector<16x32xf32>
    %cst_45 = arith.constant 9.99999996E-13 : f32
    %136 = vector.broadcast %cst_45 : f32 to vector<16x1xf32>
    %137 = arith.addf %133, %136 : vector<16x1xf32>
    %138 = math.rsqrt %137 : vector<16x1xf32>
    %139 = vector.broadcast %138 : vector<16x1xf32> to vector<16x32xf32>
    %140 = arith.mulf %135, %139 : vector<16x32xf32>
    %141 = vector.broadcast %119 : vector<1x32xf32> to vector<16x32xf32>
    %142 = arith.mulf %140, %141 : vector<16x32xf32>
    %143 = vector.broadcast %120 : vector<1x32xf32> to vector<16x32xf32>
    %144 = arith.addf %142, %143 : vector<16x32xf32>
    %145 = vector.extract_strided_slice %40 {offsets = [0, 192], sizes = [32, 64], strides = [1, 1]} : vector<32x256xf32> to vector<32x64xf32>
    %cst_46 = arith.constant dense<0.000000e+00> : vector<16x64xf32>
    %146 = tpu.matmul %144, %145, %cst_46 {dimension_numbers = #tpu.dot_dimension_numbers<[1], [0], [0], [1], [0, 0, 1, 1], [], []>} : vector<16x32xf32>, vector<32x64xf32>, vector<16x64xf32> -> vector<16x64xf32>
    %147 = vector.extract_strided_slice %42 {offsets = [4, 0], sizes = [1, 64], strides = [1, 1]} : vector<8x128xf32> to vector<1x64xf32>
    %148 = vector.broadcast %147 : vector<1x64xf32> to vector<16x64xf32>
    %149 = arith.addf %146, %148 : vector<16x64xf32>
    %150 = arith.mulf %149, %149 : vector<16x64xf32>
    %151 = arith.mulf %149, %150 : vector<16x64xf32>
    %cst_47 = arith.constant 4.471500e-02 : f32
    %152 = vector.broadcast %cst_47 : f32 to vector<16x64xf32>
    %153 = arith.mulf %152, %151 : vector<16x64xf32>
    %154 = arith.addf %149, %153 : vector<16x64xf32>
    %cst_48 = arith.constant 0.797884583 : f32
    %155 = vector.broadcast %cst_48 : f32 to vector<16x64xf32>
    %156 = arith.mulf %155, %154 : vector<16x64xf32>
    %157 = math.tanh %156 : vector<16x64xf32>
    %cst_49 = arith.constant 1.000000e+00 : f32
    %158 = vector.broadcast %cst_49 : f32 to vector<16x64xf32>
    %159 = arith.addf %158, %157 : vector<16x64xf32>
    %cst_50 = arith.constant 5.000000e-01 : f32
    %160 = vector.broadcast %cst_50 : f32 to vector<16x64xf32>
    %161 = arith.mulf %160, %159 : vector<16x64xf32>
    %162 = arith.mulf %149, %161 : vector<16x64xf32>
    %c0_51 = arith.constant 0 : index
    %c0_52 = arith.constant 0 : index
    %c0_53 = arith.constant 0 : index
    %163 = vector.load %arg4[%c0_51, %c0_52, %c0_53] : memref<2x64x32xf32, #tpu.memory_space<vmem>>, vector<1x64x32xf32>
    %164 = vector.shape_cast %163 : vector<1x64x32xf32> to vector<64x32xf32>
    %cst_54 = arith.constant dense<0.000000e+00> : vector<16x32xf32>
    %165 = tpu.matmul %162, %164, %cst_54 {dimension_numbers = #tpu.dot_dimension_numbers<[1], [0], [0], [1], [0, 0, 1, 1], [], []>} : vector<16x64xf32>, vector<64x32xf32>, vector<16x32xf32> -> vector<16x32xf32>
    %166 = vector.extract_strided_slice %42 {offsets = [5, 0], sizes = [1, 32], strides = [1, 1]} : vector<8x128xf32> to vector<1x32xf32>
    %167 = vector.broadcast %166 : vector<1x32xf32> to vector<16x32xf32>
    %168 = arith.addf %165, %167 : vector<16x32xf32>
    %169 = arith.addf %168, %144 : vector<16x32xf32>
    %170 = vector.extract_strided_slice %42 {offsets = [6, 0], sizes = [1, 32], strides = [1, 1]} : vector<8x128xf32> to vector<1x32xf32>
    %171 = vector.extract_strided_slice %42 {offsets = [7, 0], sizes = [1, 32], strides = [1, 1]} : vector<8x128xf32> to vector<1x32xf32>
    %cst_55 = arith.constant dense<0.000000e+00> : vector<16xf32>
    %172 = vector.multi_reduction <add>, %169, %cst_55 [1] : vector<16x32xf32> to vector<16xf32>
    %173 = vector.shape_cast %172 : vector<16xf32> to vector<16x1xf32>
    %cst_56 = arith.constant 3.200000e+01 : f32
    %174 = vector.broadcast %cst_56 : f32 to vector<16x1xf32>
    %175 = arith.divf %173, %174 : vector<16x1xf32>
    %176 = arith.mulf %169, %169 : vector<16x32xf32>
    %cst_57 = arith.constant dense<0.000000e+00> : vector<16xf32>
    %177 = vector.multi_reduction <add>, %176, %cst_57 [1] : vector<16x32xf32> to vector<16xf32>
    %178 = vector.shape_cast %177 : vector<16xf32> to vector<16x1xf32>
    %cst_58 = arith.constant 3.200000e+01 : f32
    %179 = vector.broadcast %cst_58 : f32 to vector<16x1xf32>
    %180 = arith.divf %178, %179 : vector<16x1xf32>
    %181 = arith.mulf %175, %175 : vector<16x1xf32>
    %182 = arith.subf %180, %181 : vector<16x1xf32>
    %cst_59 = arith.constant 0.000000e+00 : f32
    %183 = vector.broadcast %cst_59 : f32 to vector<16x1xf32>
    %184 = arith.maximumf %182, %183 : vector<16x1xf32>
    %185 = vector.broadcast %175 : vector<16x1xf32> to vector<16x32xf32>
    %186 = arith.subf %169, %185 : vector<16x32xf32>
    %cst_60 = arith.constant 9.99999996E-13 : f32
    %187 = vector.broadcast %cst_60 : f32 to vector<16x1xf32>
    %188 = arith.addf %184, %187 : vector<16x1xf32>
    %189 = math.rsqrt %188 : vector<16x1xf32>
    %190 = vector.broadcast %189 : vector<16x1xf32> to vector<16x32xf32>
    %191 = arith.mulf %186, %190 : vector<16x32xf32>
    %192 = vector.broadcast %170 : vector<1x32xf32> to vector<16x32xf32>
    %193 = arith.mulf %191, %192 : vector<16x32xf32>
    %194 = vector.broadcast %171 : vector<1x32xf32> to vector<16x32xf32>
    %195 = arith.addf %193, %194 : vector<16x32xf32>
    %c1 = arith.constant 1 : index
    %c0_61 = arith.constant 0 : index
    %c0_62 = arith.constant 0 : index
    %196 = vector.load %arg3[%c1, %c0_61, %c0_62] : memref<2x32x256xf32, #tpu.memory_space<vmem>>, vector<1x32x256xf32>
    %197 = vector.shape_cast %196 : vector<1x32x256xf32> to vector<32x256xf32>
    %c1_63 = arith.constant 1 : index
    %c0_64 = arith.constant 0 : index
    %c0_65 = arith.constant 0 : index
    %198 = vector.load %arg5[%c1_63, %c0_64, %c0_65] : memref<2x8x128xf32, #tpu.memory_space<vmem>>, vector<1x8x128xf32>
    %199 = vector.shape_cast %198 : vector<1x8x128xf32> to vector<8x128xf32>
    %200 = vector.extract_strided_slice %197 {offsets = [0, 0], sizes = [32, 192], strides = [1, 1]} : vector<32x256xf32> to vector<32x192xf32>
    %cst_66 = arith.constant dense<0.000000e+00> : vector<16x192xf32>
    %201 = tpu.matmul %195, %200, %cst_66 {dimension_numbers = #tpu.dot_dimension_numbers<[1], [0], [0], [1], [0, 0, 1, 1], [], []>} : vector<16x32xf32>, vector<32x192xf32>, vector<16x192xf32> -> vector<16x192xf32>
    %202 = vector.extract_strided_slice %201 {offsets = [0, 0], sizes = [16, 128], strides = [1, 1]} : vector<16x192xf32> to vector<16x128xf32>
    %203 = vector.extract_strided_slice %201 {offsets = [0, 128], sizes = [16, 64], strides = [1, 1]} : vector<16x192xf32> to vector<16x64xf32>
    %204 = vector.extract_strided_slice %199 {offsets = [0, 0], sizes = [1, 64], strides = [1, 1]} : vector<8x128xf32> to vector<1x64xf32>
    %205 = vector.broadcast %204 : vector<1x64xf32> to vector<16x64xf32>
    %206 = arith.addf %203, %205 : vector<16x64xf32>
    %cst_67 = arith.constant 0.000000e+00 : f32
    %207 = vector.broadcast %cst_67 : f32 to vector<16x32xf32>
    %208 = vector.extract_strided_slice %206 {offsets = [0, 0], sizes = [16, 8], strides = [1, 1]} : vector<16x64xf32> to vector<16x8xf32>
    %209 = vector.extract_strided_slice %206 {offsets = [0, 32], sizes = [16, 8], strides = [1, 1]} : vector<16x64xf32> to vector<16x8xf32>
    %cst_68 = arith.constant dense<0.000000e+00> : vector<16x16xf32>
    %210 = tpu.matmul %208, %209, %cst_68 {dimension_numbers = #tpu.dot_dimension_numbers<[1], [1], [0], [0], [0, 0, 1, 0], [], []>} : vector<16x8xf32>, vector<16x8xf32>, vector<16x16xf32> -> vector<16x16xf32>
    %211 = arith.addf %210, %38 : vector<16x16xf32>
    %cst_69 = arith.constant dense<0xFF800000> : vector<16xf32>
    %212 = vector.multi_reduction <maximumf>, %211, %cst_69 [1] : vector<16x16xf32> to vector<16xf32>
    %213 = vector.shape_cast %212 : vector<16xf32> to vector<16x1xf32>
    %214 = vector.broadcast %213 : vector<16x1xf32> to vector<16x16xf32>
    %215 = arith.subf %211, %214 : vector<16x16xf32>
    %216 = math.exp %215 : vector<16x16xf32>
    %cst_70 = arith.constant dense<0.000000e+00> : vector<16xf32>
    %217 = vector.multi_reduction <add>, %216, %cst_70 [1] : vector<16x16xf32> to vector<16xf32>
    %218 = vector.shape_cast %217 : vector<16xf32> to vector<16x1xf32>
    %219 = vector.broadcast %218 : vector<16x1xf32> to vector<16x16xf32>
    %220 = arith.divf %216, %219 : vector<16x16xf32>
    %221 = vector.extract_strided_slice %202 {offsets = [0, 0], sizes = [16, 32], strides = [1, 1]} : vector<16x128xf32> to vector<16x32xf32>
    %cst_71 = arith.constant dense<0.000000e+00> : vector<16x32xf32>
    %222 = tpu.matmul %220, %221, %cst_71 {dimension_numbers = #tpu.dot_dimension_numbers<[1], [0], [0], [1], [0, 0, 1, 1], [], []>} : vector<16x16xf32>, vector<16x32xf32>, vector<16x32xf32> -> vector<16x32xf32>
    %223 = arith.addf %207, %222 : vector<16x32xf32>
    %224 = vector.extract_strided_slice %206 {offsets = [0, 8], sizes = [16, 8], strides = [1, 1]} : vector<16x64xf32> to vector<16x8xf32>
    %225 = vector.extract_strided_slice %206 {offsets = [0, 40], sizes = [16, 8], strides = [1, 1]} : vector<16x64xf32> to vector<16x8xf32>
    %cst_72 = arith.constant dense<0.000000e+00> : vector<16x16xf32>
    %226 = tpu.matmul %224, %225, %cst_72 {dimension_numbers = #tpu.dot_dimension_numbers<[1], [1], [0], [0], [0, 0, 1, 0], [], []>} : vector<16x8xf32>, vector<16x8xf32>, vector<16x16xf32> -> vector<16x16xf32>
    %227 = arith.addf %226, %38 : vector<16x16xf32>
    %cst_73 = arith.constant dense<0xFF800000> : vector<16xf32>
    %228 = vector.multi_reduction <maximumf>, %227, %cst_73 [1] : vector<16x16xf32> to vector<16xf32>
    %229 = vector.shape_cast %228 : vector<16xf32> to vector<16x1xf32>
    %230 = vector.broadcast %229 : vector<16x1xf32> to vector<16x16xf32>
    %231 = arith.subf %227, %230 : vector<16x16xf32>
    %232 = math.exp %231 : vector<16x16xf32>
    %cst_74 = arith.constant dense<0.000000e+00> : vector<16xf32>
    %233 = vector.multi_reduction <add>, %232, %cst_74 [1] : vector<16x16xf32> to vector<16xf32>
    %234 = vector.shape_cast %233 : vector<16xf32> to vector<16x1xf32>
    %235 = vector.broadcast %234 : vector<16x1xf32> to vector<16x16xf32>
    %236 = arith.divf %232, %235 : vector<16x16xf32>
    %237 = vector.extract_strided_slice %202 {offsets = [0, 32], sizes = [16, 32], strides = [1, 1]} : vector<16x128xf32> to vector<16x32xf32>
    %cst_75 = arith.constant dense<0.000000e+00> : vector<16x32xf32>
    %238 = tpu.matmul %236, %237, %cst_75 {dimension_numbers = #tpu.dot_dimension_numbers<[1], [0], [0], [1], [0, 0, 1, 1], [], []>} : vector<16x16xf32>, vector<16x32xf32>, vector<16x32xf32> -> vector<16x32xf32>
    %239 = arith.addf %223, %238 : vector<16x32xf32>
    %240 = vector.extract_strided_slice %206 {offsets = [0, 16], sizes = [16, 8], strides = [1, 1]} : vector<16x64xf32> to vector<16x8xf32>
    %241 = vector.extract_strided_slice %206 {offsets = [0, 48], sizes = [16, 8], strides = [1, 1]} : vector<16x64xf32> to vector<16x8xf32>
    %cst_76 = arith.constant dense<0.000000e+00> : vector<16x16xf32>
    %242 = tpu.matmul %240, %241, %cst_76 {dimension_numbers = #tpu.dot_dimension_numbers<[1], [1], [0], [0], [0, 0, 1, 0], [], []>} : vector<16x8xf32>, vector<16x8xf32>, vector<16x16xf32> -> vector<16x16xf32>
    %243 = arith.addf %242, %38 : vector<16x16xf32>
    %cst_77 = arith.constant dense<0xFF800000> : vector<16xf32>
    %244 = vector.multi_reduction <maximumf>, %243, %cst_77 [1] : vector<16x16xf32> to vector<16xf32>
    %245 = vector.shape_cast %244 : vector<16xf32> to vector<16x1xf32>
    %246 = vector.broadcast %245 : vector<16x1xf32> to vector<16x16xf32>
    %247 = arith.subf %243, %246 : vector<16x16xf32>
    %248 = math.exp %247 : vector<16x16xf32>
    %cst_78 = arith.constant dense<0.000000e+00> : vector<16xf32>
    %249 = vector.multi_reduction <add>, %248, %cst_78 [1] : vector<16x16xf32> to vector<16xf32>
    %250 = vector.shape_cast %249 : vector<16xf32> to vector<16x1xf32>
    %251 = vector.broadcast %250 : vector<16x1xf32> to vector<16x16xf32>
    %252 = arith.divf %248, %251 : vector<16x16xf32>
    %253 = vector.extract_strided_slice %202 {offsets = [0, 64], sizes = [16, 32], strides = [1, 1]} : vector<16x128xf32> to vector<16x32xf32>
    %cst_79 = arith.constant dense<0.000000e+00> : vector<16x32xf32>
    %254 = tpu.matmul %252, %253, %cst_79 {dimension_numbers = #tpu.dot_dimension_numbers<[1], [0], [0], [1], [0, 0, 1, 1], [], []>} : vector<16x16xf32>, vector<16x32xf32>, vector<16x32xf32> -> vector<16x32xf32>
    %255 = arith.addf %239, %254 : vector<16x32xf32>
    %256 = vector.extract_strided_slice %206 {offsets = [0, 24], sizes = [16, 8], strides = [1, 1]} : vector<16x64xf32> to vector<16x8xf32>
    %257 = vector.extract_strided_slice %206 {offsets = [0, 56], sizes = [16, 8], strides = [1, 1]} : vector<16x64xf32> to vector<16x8xf32>
    %cst_80 = arith.constant dense<0.000000e+00> : vector<16x16xf32>
    %258 = tpu.matmul %256, %257, %cst_80 {dimension_numbers = #tpu.dot_dimension_numbers<[1], [1], [0], [0], [0, 0, 1, 0], [], []>} : vector<16x8xf32>, vector<16x8xf32>, vector<16x16xf32> -> vector<16x16xf32>
    %259 = arith.addf %258, %38 : vector<16x16xf32>
    %cst_81 = arith.constant dense<0xFF800000> : vector<16xf32>
    %260 = vector.multi_reduction <maximumf>, %259, %cst_81 [1] : vector<16x16xf32> to vector<16xf32>
    %261 = vector.shape_cast %260 : vector<16xf32> to vector<16x1xf32>
    %262 = vector.broadcast %261 : vector<16x1xf32> to vector<16x16xf32>
    %263 = arith.subf %259, %262 : vector<16x16xf32>
    %264 = math.exp %263 : vector<16x16xf32>
    %cst_82 = arith.constant dense<0.000000e+00> : vector<16xf32>
    %265 = vector.multi_reduction <add>, %264, %cst_82 [1] : vector<16x16xf32> to vector<16xf32>
    %266 = vector.shape_cast %265 : vector<16xf32> to vector<16x1xf32>
    %267 = vector.broadcast %266 : vector<16x1xf32> to vector<16x16xf32>
    %268 = arith.divf %264, %267 : vector<16x16xf32>
    %269 = vector.extract_strided_slice %202 {offsets = [0, 96], sizes = [16, 32], strides = [1, 1]} : vector<16x128xf32> to vector<16x32xf32>
    %cst_83 = arith.constant dense<0.000000e+00> : vector<16x32xf32>
    %270 = tpu.matmul %268, %269, %cst_83 {dimension_numbers = #tpu.dot_dimension_numbers<[1], [0], [0], [1], [0, 0, 1, 1], [], []>} : vector<16x16xf32>, vector<16x32xf32>, vector<16x32xf32> -> vector<16x32xf32>
    %271 = arith.addf %255, %270 : vector<16x32xf32>
    %272 = vector.extract_strided_slice %199 {offsets = [1, 0], sizes = [1, 32], strides = [1, 1]} : vector<8x128xf32> to vector<1x32xf32>
    %273 = vector.broadcast %272 : vector<1x32xf32> to vector<16x32xf32>
    %274 = arith.addf %271, %273 : vector<16x32xf32>
    %275 = arith.addf %274, %195 : vector<16x32xf32>
    %276 = vector.extract_strided_slice %199 {offsets = [2, 0], sizes = [1, 32], strides = [1, 1]} : vector<8x128xf32> to vector<1x32xf32>
    %277 = vector.extract_strided_slice %199 {offsets = [3, 0], sizes = [1, 32], strides = [1, 1]} : vector<8x128xf32> to vector<1x32xf32>
    %cst_84 = arith.constant dense<0.000000e+00> : vector<16xf32>
    %278 = vector.multi_reduction <add>, %275, %cst_84 [1] : vector<16x32xf32> to vector<16xf32>
    %279 = vector.shape_cast %278 : vector<16xf32> to vector<16x1xf32>
    %cst_85 = arith.constant 3.200000e+01 : f32
    %280 = vector.broadcast %cst_85 : f32 to vector<16x1xf32>
    %281 = arith.divf %279, %280 : vector<16x1xf32>
    %282 = arith.mulf %275, %275 : vector<16x32xf32>
    %cst_86 = arith.constant dense<0.000000e+00> : vector<16xf32>
    %283 = vector.multi_reduction <add>, %282, %cst_86 [1] : vector<16x32xf32> to vector<16xf32>
    %284 = vector.shape_cast %283 : vector<16xf32> to vector<16x1xf32>
    %cst_87 = arith.constant 3.200000e+01 : f32
    %285 = vector.broadcast %cst_87 : f32 to vector<16x1xf32>
    %286 = arith.divf %284, %285 : vector<16x1xf32>
    %287 = arith.mulf %281, %281 : vector<16x1xf32>
    %288 = arith.subf %286, %287 : vector<16x1xf32>
    %cst_88 = arith.constant 0.000000e+00 : f32
    %289 = vector.broadcast %cst_88 : f32 to vector<16x1xf32>
    %290 = arith.maximumf %288, %289 : vector<16x1xf32>
    %291 = vector.broadcast %281 : vector<16x1xf32> to vector<16x32xf32>
    %292 = arith.subf %275, %291 : vector<16x32xf32>
    %cst_89 = arith.constant 9.99999996E-13 : f32
    %293 = vector.broadcast %cst_89 : f32 to vector<16x1xf32>
    %294 = arith.addf %290, %293 : vector<16x1xf32>
    %295 = math.rsqrt %294 : vector<16x1xf32>
    %296 = vector.broadcast %295 : vector<16x1xf32> to vector<16x32xf32>
    %297 = arith.mulf %292, %296 : vector<16x32xf32>
    %298 = vector.broadcast %276 : vector<1x32xf32> to vector<16x32xf32>
    %299 = arith.mulf %297, %298 : vector<16x32xf32>
    %300 = vector.broadcast %277 : vector<1x32xf32> to vector<16x32xf32>
    %301 = arith.addf %299, %300 : vector<16x32xf32>
    %302 = vector.extract_strided_slice %197 {offsets = [0, 192], sizes = [32, 64], strides = [1, 1]} : vector<32x256xf32> to vector<32x64xf32>
    %cst_90 = arith.constant dense<0.000000e+00> : vector<16x64xf32>
    %303 = tpu.matmul %301, %302, %cst_90 {dimension_numbers = #tpu.dot_dimension_numbers<[1], [0], [0], [1], [0, 0, 1, 1], [], []>} : vector<16x32xf32>, vector<32x64xf32>, vector<16x64xf32> -> vector<16x64xf32>
    %304 = vector.extract_strided_slice %199 {offsets = [4, 0], sizes = [1, 64], strides = [1, 1]} : vector<8x128xf32> to vector<1x64xf32>
    %305 = vector.broadcast %304 : vector<1x64xf32> to vector<16x64xf32>
    %306 = arith.addf %303, %305 : vector<16x64xf32>
    %307 = arith.mulf %306, %306 : vector<16x64xf32>
    %308 = arith.mulf %306, %307 : vector<16x64xf32>
    %cst_91 = arith.constant 4.471500e-02 : f32
    %309 = vector.broadcast %cst_91 : f32 to vector<16x64xf32>
    %310 = arith.mulf %309, %308 : vector<16x64xf32>
    %311 = arith.addf %306, %310 : vector<16x64xf32>
    %cst_92 = arith.constant 0.797884583 : f32
    %312 = vector.broadcast %cst_92 : f32 to vector<16x64xf32>
    %313 = arith.mulf %312, %311 : vector<16x64xf32>
    %314 = math.tanh %313 : vector<16x64xf32>
    %cst_93 = arith.constant 1.000000e+00 : f32
    %315 = vector.broadcast %cst_93 : f32 to vector<16x64xf32>
    %316 = arith.addf %315, %314 : vector<16x64xf32>
    %cst_94 = arith.constant 5.000000e-01 : f32
    %317 = vector.broadcast %cst_94 : f32 to vector<16x64xf32>
    %318 = arith.mulf %317, %316 : vector<16x64xf32>
    %319 = arith.mulf %306, %318 : vector<16x64xf32>
    %c1_95 = arith.constant 1 : index
    %c0_96 = arith.constant 0 : index
    %c0_97 = arith.constant 0 : index
    %320 = vector.load %arg4[%c1_95, %c0_96, %c0_97] : memref<2x64x32xf32, #tpu.memory_space<vmem>>, vector<1x64x32xf32>
    %321 = vector.shape_cast %320 : vector<1x64x32xf32> to vector<64x32xf32>
    %cst_98 = arith.constant dense<0.000000e+00> : vector<16x32xf32>
    %322 = tpu.matmul %319, %321, %cst_98 {dimension_numbers = #tpu.dot_dimension_numbers<[1], [0], [0], [1], [0, 0, 1, 1], [], []>} : vector<16x64xf32>, vector<64x32xf32>, vector<16x32xf32> -> vector<16x32xf32>
    %323 = vector.extract_strided_slice %199 {offsets = [5, 0], sizes = [1, 32], strides = [1, 1]} : vector<8x128xf32> to vector<1x32xf32>
    %324 = vector.broadcast %323 : vector<1x32xf32> to vector<16x32xf32>
    %325 = arith.addf %322, %324 : vector<16x32xf32>
    %326 = arith.addf %325, %301 : vector<16x32xf32>
    %327 = vector.extract_strided_slice %199 {offsets = [6, 0], sizes = [1, 32], strides = [1, 1]} : vector<8x128xf32> to vector<1x32xf32>
    %328 = vector.extract_strided_slice %199 {offsets = [7, 0], sizes = [1, 32], strides = [1, 1]} : vector<8x128xf32> to vector<1x32xf32>
    %cst_99 = arith.constant dense<0.000000e+00> : vector<16xf32>
    %329 = vector.multi_reduction <add>, %326, %cst_99 [1] : vector<16x32xf32> to vector<16xf32>
    %330 = vector.shape_cast %329 : vector<16xf32> to vector<16x1xf32>
    %cst_100 = arith.constant 3.200000e+01 : f32
    %331 = vector.broadcast %cst_100 : f32 to vector<16x1xf32>
    %332 = arith.divf %330, %331 : vector<16x1xf32>
    %333 = arith.mulf %326, %326 : vector<16x32xf32>
    %cst_101 = arith.constant dense<0.000000e+00> : vector<16xf32>
    %334 = vector.multi_reduction <add>, %333, %cst_101 [1] : vector<16x32xf32> to vector<16xf32>
    %335 = vector.shape_cast %334 : vector<16xf32> to vector<16x1xf32>
    %cst_102 = arith.constant 3.200000e+01 : f32
    %336 = vector.broadcast %cst_102 : f32 to vector<16x1xf32>
    %337 = arith.divf %335, %336 : vector<16x1xf32>
    %338 = arith.mulf %332, %332 : vector<16x1xf32>
    %339 = arith.subf %337, %338 : vector<16x1xf32>
    %cst_103 = arith.constant 0.000000e+00 : f32
    %340 = vector.broadcast %cst_103 : f32 to vector<16x1xf32>
    %341 = arith.maximumf %339, %340 : vector<16x1xf32>
    %342 = vector.broadcast %332 : vector<16x1xf32> to vector<16x32xf32>
    %343 = arith.subf %326, %342 : vector<16x32xf32>
    %cst_104 = arith.constant 9.99999996E-13 : f32
    %344 = vector.broadcast %cst_104 : f32 to vector<16x1xf32>
    %345 = arith.addf %341, %344 : vector<16x1xf32>
    %346 = math.rsqrt %345 : vector<16x1xf32>
    %347 = vector.broadcast %346 : vector<16x1xf32> to vector<16x32xf32>
    %348 = arith.mulf %343, %347 : vector<16x32xf32>
    %349 = vector.broadcast %327 : vector<1x32xf32> to vector<16x32xf32>
    %350 = arith.mulf %348, %349 : vector<16x32xf32>
    %351 = vector.broadcast %328 : vector<1x32xf32> to vector<16x32xf32>
    %352 = arith.addf %350, %351 : vector<16x32xf32>
    %353 = vector.extract_strided_slice %352 {offsets = [0, 0], sizes = [1, 32], strides = [1, 1]} : vector<16x32xf32> to vector<1x32xf32>
    %354 = vector.extract_strided_slice %352 {offsets = [8, 0], sizes = [1, 32], strides = [1, 1]} : vector<16x32xf32> to vector<1x32xf32>
    %355 = tpu.concatenate %353, %354 in 0 : vector<1x32xf32>, vector<1x32xf32> -> vector<2x32xf32>
    %c0_105 = arith.constant 0 : index
    %c0_106 = arith.constant 0 : index
    %356 = vector.load %arg6[%c0_105, %c0_106] : memref<32x160xf32, #tpu.memory_space<vmem>>, vector<32x160xf32>
    %357 = vector.extract_strided_slice %356 {offsets = [0, 128], sizes = [32, 32], strides = [1, 1]} : vector<32x160xf32> to vector<32x32xf32>
    %cst_107 = arith.constant dense<0.000000e+00> : vector<2x32xf32>
    %358 = tpu.matmul %355, %357, %cst_107 {dimension_numbers = #tpu.dot_dimension_numbers<[1], [0], [0], [1], [0, 0, 1, 1], [], []>} : vector<2x32xf32>, vector<32x32xf32>, vector<2x32xf32> -> vector<2x32xf32>
    %359 = vector.extract_strided_slice %0 {offsets = [2, 0], sizes = [1, 32], strides = [1, 1]} : vector<4x128xf32> to vector<1x32xf32>
    %360 = vector.broadcast %359 : vector<1x32xf32> to vector<2x32xf32>
    %361 = arith.addf %358, %360 : vector<2x32xf32>
    %362 = math.tanh %361 : vector<2x32xf32>
    %363 = vector.extract_strided_slice %356 {offsets = [0, 0], sizes = [32, 128], strides = [1, 1]} : vector<32x160xf32> to vector<32x128xf32>
    %cst_108 = arith.constant dense<0.000000e+00> : vector<2x128xf32>
    %364 = tpu.matmul %362, %363, %cst_108 {dimension_numbers = #tpu.dot_dimension_numbers<[1], [0], [0], [1], [0, 0, 1, 1], [], []>} : vector<2x32xf32>, vector<32x128xf32>, vector<2x128xf32> -> vector<2x128xf32>
    %365 = vector.extract_strided_slice %0 {offsets = [3, 0], sizes = [1, 128], strides = [1, 1]} : vector<4x128xf32> to vector<1x128xf32>
    %366 = vector.broadcast %365 : vector<1x128xf32> to vector<2x128xf32>
    %367 = arith.addf %364, %366 : vector<2x128xf32>
    %cst_109 = arith.constant 0.000000e+00 : f32
    %368 = vector.broadcast %cst_109 : f32 to vector<2x128xf32>
    %369 = arith.maximumf %367, %368 : vector<2x128xf32>
    %c0_110 = arith.constant 0 : index
    %c0_111 = arith.constant 0 : index
    %370 = vector.load %arg8[%c0_110, %c0_111] : memref<2x128xf32, #tpu.memory_space<vmem>>, vector<2x128xf32>
    tpu.vector_store %arg8[%c0_110, %c0_111], %369 {strides = array<i32>} : memref<2x128xf32, #tpu.memory_space<vmem>>, vector<2x128xf32>,
    return
  }
}

</mosaic_0001>

<bundles_post_ra>
// kernel: bert_dssm_forward.1
= control target key start
LH: loop header
LB: loop body
LE: loop exit
PB: predicated region body
PF: predicated region fallthrough
CT: control target
= control target key end

     0   :  { %v2053_v2 = vmov 0   ;;  %s2748_s0 = inlined_call_operand.vmem [shape: s32[16,1], index: 0, kind: input, shape index: {}]   ;;  %s2749_s1 = inlined_call_operand.vmem [shape: f32[16,16], index: 1, kind: input, shape index: {}]   ;;  %s2750_s2 = inlined_call_operand.vmem [shape: f32[80,32], index: 2, kind: input, shape index: {}]   ;;  %s2751_s3 = inlined_call_operand.vmem [shape: f32[2,32,256], index: 3, kind: input, shape index: {}]   ;;  %s2752_s4 = inlined_call_operand.vmem [shape: f32[2,64,32], index: 4, kind: input, shape index: {}]   ;;  %s2753_s5 = inlined_call_operand.vmem [shape: f32[2,8,128], index: 5, kind: input, shape index: {}]   ;;  %s2754_s6 = inlined_call_operand.vmem [shape: f32[32,160], index: 6, kind: input, shape index: {}]   ;;  %s2755_s7 = inlined_call_operand.vmem [shape: f32[4,128], index: 7, kind: input, shape index: {}]   ;;  %s2756_s8 = inlined_call_operand.hbm [shape: f32[2,128], index: 8, kind: output, shape index: {}]  }
   0x1   :  { %v31_v0 = vld [vmem:[%s2748_s0] sm:$0xff]  ;;  %v52_v1 = vld [vmem:[%s2750_s2 + $0x38] sm:$0xff]  ;;  %1876 = vset.pattern.permute.xlu0 %v2053_v2  ;;  %v51_v3 = vld [vmem:[%s2750_s2 + $0x30] sm:$0xff] }
   0x2   :  { %70 = vmatpush.msra.mxu0 %v52_v1  ;;  %36 = vperm.xlu0 %1876, %v31_v0   ;;  %v50_v4 = vld [vmem:[%s2750_s2 + $0x28] sm:$0xff] }
   0x4   :  { %71 = vmatpush.msra.mxu0 %v51_v3 }
   0x5   :  { %13 = vsyncpa [#allocation3], 0  ;;  %v49_v5 = vld [vmem:[%s2750_s2 + $0x20] sm:$0xff]  ;;  %v48_v6 = vld [vmem:[%s2750_s2 + $0x18] sm:$0xff]  ;;  %v33_v11 = vlaneseq  ;;  %vm55_vm0 = vcmask 523264   ;;  %v2054_v14 = vmov 0.0  }
   0x6   :  { %72 = vmatpush.msra.mxu0 %v50_v4  ;;  %v32_v7 = vld [vmem:[%s2748_s0 + $0x8] sm:$0xff]  ;;  %v47_v8 = vld [vmem:[%s2750_s2 + $0x10] sm:$0xff]  ;;  %v45_v10 = vld [vmem:[%s2750_s2] sm:$0xff]  ;;  %vm85_vm3 = vcmask 261120   ;;  %v2055_v30 = vmov 32.0   ;;  %s2056_s0 = smov 120  }
   0x7   :  { %v46_v9 = vld [vmem:[%s2750_s2 + $0x8] sm:$0xff]  ;;  %v34_v12 = vand.u32 127, %v33_v11  ;;  %v53_v18 = vld [vmem:[%s2750_s2 + $0x40] sm:$0xff]  ;;  %1927 = vrcp.f32 %v2055_v30  ;;  %v157_v37 = vld [vmem:[%s2751_s3 + $0x30] sm:$0xff]  ;;  %s2057_s25 = smov 88   ;;  %s2058_s26 = smov 96  }
   0x8   :  { %73 = vmatpush.msra.mxu0 %v49_v5  ;;  %v54_v22 = vld [vmem:[%s2750_s2 + $0x48] sm:$0xff]  ;;  %v2169_v38 = vld [vmem:[%s2751_s3 + $0x38] sm:$0xff]  ;;  %178 = vmatpush.msra.mxu1 %v157_v37  ;;  %v155_v40 = vld [vmem:[%s2751_s3 + $0x20] sm:$0xff]  ;;  %vm221_vm11 = vcmask 64512   ;;  %vm253_vm12 = vcmask 130048   ;;  %s2059_s30 = smov 72  }
   0x9   :  { %201 = vmatpush.msra.mxu2 %v2169_v38  ;;  %v2180_v41 = vld [vmem:[%s2751_s3 + $0x28] sm:$0xff]  ;;  %v153_v43 = vld [vmem:[%s2751_s3 + $0x10] sm:$0xff]  ;;  %v2190_v44 = vld [vmem:[%s2751_s3 + $0x18] sm:$0xff]  ;;  %s2060_s9 = smov 80   ;;  %s2061_s10 = smov 112  }
   0xa   :  { %74 = vmatpush.msra.mxu0 %v48_v6  ;;  %39 = vperm.xlu0 %1876, %v32_v7   ;;  %v151_v45 = vld [vmem:[%s2751_s3] sm:$0xff]  ;;  %v2199_v46 = vld [vmem:[%s2751_s3 + $0x8] sm:$0xff]  ;;  %v1892_v49 = vpack.i.bf16 %v2180_v41, %v2169_v38  ;;  %s2062_s11 = smov 104   ;;  %s2063_s12 = smov 32  }
   0xb   :  { %179 = vmatpush.msra.mxu1 %v155_v40  ;;  %202 = vmatpush.msra.mxu2 %v2180_v41  ;;  %v1897_v50 = vpack.i.bf16 %v2199_v46, %v2190_v44  ;;  %v30_v4 = vld [vmem:[%s2755_s7] sm:$0xf]  ;;  %s2064_s13 = smov 64  }
   0xc   :  { %75 = vmatpush.msra.mxu0 %v47_v8 }
   0xd   :  { %v1928_v31 = vpop.eup %1927  ;;  %180 = vmatpush.msra.mxu1 %v153_v43  ;;  %203 = vmatpush.msra.mxu2 %v2190_v44  ;;  %v2258_v43 = vld [vmem:[%s2749_s1] sm:$0xff] }
   0xe   :  { %76 = vmatpush.msra.mxu0 %v46_v9  ;;  %v93_v32 = vmul.f32 32.0, %v1928_v31  ;;  %vm97_vm4 = vweird.f32 %v1928_v31  ;;  %v143_v9 = vperm.slane %v30_v4, 0 }
   0xf   :  { %181 = vmatpush.msra.mxu1 %v151_v45  ;;  %204 = vmatpush.msra.mxu2 %v2199_v46 }
  0x10   :  { %77 = vmatpush.msra.mxu0 %v45_v10  ;;  %v94_v33 = vsub.f32 1.0, %v93_v32 }
  0x12   :  { %v95_v34 = vmul.f32 %v1928_v31, %v94_v33 }
  0x14   :  { %v96_v35 = vadd.f32 %v1928_v31, %v95_v34 }
  0x16   :  { %v2171_v39 = vsel %vm97_vm4, %v1928_v31, %v96_v35 }
  0x74   :  { %v37_v13 = vpop.permute.xlu0 %36 }
  0x75   :  { %vm41_vm1 = vcmp.eq.s32.totalorder %v34_v12, %v37_v13  ;;  %v146_v13 = vperm.slane %v30_v4, 1 }
  0x76   :  { %v43_v15 = vsel %vm41_vm1, 1.0, %v2054_v14 }
  0x77   :  { %1778 = vmatmul.msk.f32.vlgmr.msra.gmra.mxu0 %vm55_vm0, %v43_v15 }
  0x7c   :  { %v40_v16 = vpop.permute.xlu0 %39 }
  0x7d   :  { %vm42_vm2 = vcmp.eq.s32.totalorder %v34_v12, %v40_v16 }
  0x7e   :  { %v44_v17 = vsel %vm42_vm2, 1.0, %v2054_v14 }
  0x7f   :  { %1779 = vmatmul.msk.f32.gmra.mxu0 %vm55_vm0, %v44_v17 }
  0xf4   :  { %v79_v19 = vpop.f32.mrf.mxu0 }
  0xf5   :  { %v2146_v20 = vadd.f32 %v79_v19, %v53_v18 }
  0xf7   :  { %v86_v21 = vsel %vm85_vm3, %v2146_v20, 0.0  ;;  %v101_v23 = vmul.f32 %v2146_v20, %v2146_v20 }
  0xf8   :  { %87 = vadd.xlane.f32.xlu1 %v86_v21 }
  0xf9   :  { %v103_v26 = vsel %vm85_vm3, %v101_v23, 0.0 }
  0xfc   :  { %v82_v24 = vpop.f32.mrf.mxu0 }
  0xfd   :  { %v2155_v25 = vadd.f32 %v82_v24, %v54_v22  ;;  %v2229_v24 = vld [vmem:[%s2753_s5] sm:$0xff] }
  0xff   :  { %v89_v27 = vsel %vm85_vm3, %v2155_v25, 0.0  ;;  %v102_v28 = vmul.f32 %v2155_v25, %v2155_v25 }
 0x100   :  { %104 = vadd.xlane.f32.xlu1 %v103_v26  ;;  %90 = vadd.xlane.f32.xlu2 %v89_v27  ;;  %v212_v26 = vperm.slane %v2229_v24, 0 }
 0x101   :  { %v106_v29 = vsel %vm85_vm3, %v102_v28, 0.0 }
 0x108   :  { %107 = vadd.xlane.f32.xlu2 %v106_v29 }
 0x16b   :  { %v88_v36 = vpop.xlane.xlu1 %87 }
 0x16c   :  { %v99_v42 = vmul.f32 %v2171_v39, %v88_v36 }
 0x16e   :  { %v111_v51 = vmul.f32 %v99_v42, %v99_v42  ;;  %v117_v8 = vsub.f32 %v2146_v20, %v99_v42 }
 0x173   :  { %v105_v47 = vpop.xlane.xlu1 %104  ;;  %v91_v48 = vpop.xlane.xlu2 %90 }
 0x174   :  { %v109_v52 = vmul.f32 %v105_v47, %v2171_v39  ;;  %v100_v55 = vmul.f32 %v2171_v39, %v91_v48 }
 0x176   :  { %v113_v53 = vsub.f32 %v109_v52, %v111_v51  ;;  %v112_v58 = vmul.f32 %v100_v55, %v100_v55  ;;  %v118_v19 = vsub.f32 %v2155_v25, %v100_v55  ;;  %v2265_v51 = vld [vmem:[%s2749_s1 + $0x8] sm:$0xff] }
 0x178   :  { %v115_v54 = vmax.f32 %v113_v53, 0.0 }
 0x17a   :  { %v119_v56 = vadd.f32 1e-12, %v115_v54 }
 0x17b   :  { %v108_v57 = vpop.xlane.xlu2 %107 }
 0x17c   :  { %1929 = vrsqrt.f32 %v119_v56  ;;  %v110_v59 = vmul.f32 %v108_v57, %v2171_v39  ;;  %vm127_vm6 = vweird.f32 %v119_v56 }
 0x17e   :  { %v114_v60 = vsub.f32 %v110_v59, %v112_v58 }
 0x180   :  { %v116_v61 = vmax.f32 %v114_v60, 0.0 }
 0x182   :  { %v1930_v62 = vpop.eup %1929  ;;  %v120_v63 = vadd.f32 1e-12, %v116_v61 }
 0x183   :  { %v122_v0 = vmul.f32 %v1930_v62, %v119_v56  ;;  %vm128_vm5 = vweird.f32 %v1930_v62 }
 0x184   :  { %1931 = vrsqrt.f32 %v120_v63  ;;  %vm129_vm7 = vmor %vm127_vm6, %vm128_vm5  ;;  %vm137_vm9 = vweird.f32 %v120_v63 }
 0x185   :  { %v123_v1 = vmul.f32 %v1930_v62, %v122_v0 }
 0x187   :  { %v124_v2 = vmul.f32 0.5, %v123_v1 }
 0x189   :  { %v125_v3 = vsub.f32 1.5, %v124_v2 }
 0x18a   :  { %v1932_v5 = vpop.eup %1931 }
 0x18b   :  { %v126_v6 = vmul.f32 %v1930_v62, %v125_v3  ;;  %v132_v7 = vmul.f32 %v1932_v5, %v120_v63  ;;  %vm138_vm8 = vweird.f32 %v1932_v5 }
 0x18c   :  { %vm139_vm10 = vmor %vm137_vm9, %vm138_vm8 }
 0x18d   :  { %v133_v10 = vmul.f32 %v1932_v5, %v132_v7  ;;  %v130_v11 = vsel %vm129_vm7, %v1930_v62, %v126_v6 }
 0x18e   :  { %v141_v12 = vmul.f32 %v130_v11, %v117_v8 }
 0x18f   :  { %v134_v14 = vmul.f32 0.5, %v133_v10 }
 0x190   :  { %v144_v15 = vmul.f32 %v143_v9, %v141_v12 }
 0x191   :  { %v135_v16 = vsub.f32 1.5, %v134_v14 }
 0x192   :  { %v2213_v17 = vadd.f32 %v146_v13, %v144_v15 }
 0x193   :  { %v136_v18 = vmul.f32 %v1932_v5, %v135_v16 }
 0x194   :  { %1780 = vmatmul.msk.f32.vlgmr.msra.gmra.mxu1 %vm85_vm3, %v2213_v17  ;;  %1782 = vmatmul.msk.f32.vlgmr.msra.gmra.mxu2 %vm85_vm3, %v2213_v17 }
 0x195   :  { %v140_v20 = vsel %vm139_vm10, %v1932_v5, %v136_v18 }
 0x196   :  { %v142_v21 = vmul.f32 %v140_v20, %v118_v19 }
 0x198   :  { %v145_v22 = vmul.f32 %v143_v9, %v142_v21 }
 0x19a   :  { %v2220_v23 = vadd.f32 %v146_v13, %v145_v22 }
 0x19c   :  { %1781 = vmatmul.msk.f32.gmra.mxu1 %vm85_vm3, %v2220_v23  ;;  %1783 = vmatmul.msk.f32.gmra.mxu2 %vm85_vm3, %v2220_v23 }
 0x211   :  { %v2231_v25 = vpop.f32.mrf.mxu1 }
 0x217   :  { %v206_v27 = vpop.f32.mrf.mxu2 }
 0x218   :  { %v2234_v28 = vadd.f32 %v212_v26, %v206_v27 }
 0x219   :  { %v186_v29 = vpop.f32.mrf.mxu1 }
 0x21a   :  { %302 = vrot.lane.b32.xlu2 %v2234_v28, %s2056_s0  ;;  %306 = vrot.lane.b32.xlu1 %v2234_v28, %s2057_s25  ;;  %v2243_v32 = vpack.i.bf16 %v2231_v25, %v186_v29 }
 0x21f   :  { %v209_v30 = vpop.f32.mrf.mxu2 }
 0x220   :  { %v2240_v31 = vadd.f32 %v212_v26, %v209_v30 }
 0x222   :  { %308 = vrot.lane.b32.xlu0 %v2240_v31, %s2057_s25  ;;  %1878 = vrot.lane.b32.xlu1 %v2243_v32, %s2058_s26 }
 0x22a   :  { %304 = vrot.lane.b32.xlu0 %v2240_v31, %s2056_s0 }
 0x274   :  { %v303_v40 = vpop.permute.xlu2 %302 }
 0x28c   :  { %v307_v33 = vpop.permute.xlu1 %306 }
 0x294   :  { %v309_v34 = vpop.permute.xlu0 %308  ;;  %v1879_v35 = vpop.permute.xlu1 %1878 }
 0x295   :  { %1788 = vmatpush.xpose.msk.msrb.mxu1 %vm221_vm11, %v309_v34  ;;  %v1880_v36 = vunpack.i.l.bf16 %v1879_v35  ;;  %v1881_v37 = vunpack.i.h.bf16 %v1879_v35 }
 0x297   :  { %417 = vmatpush.msrb.mxu2 %v1880_v36 }
 0x299   :  { %1789 = vmatpush.xpose.msk.msrb.mxu1 %vm221_vm11, %v307_v33  ;;  %418 = vmatpush.msrb.mxu2 %v1881_v37 }
 0x29c   :  { %1790 = vmatmul.msk.f32.vlgmr.msrb.gmra.mxu1 %vm221_vm11, %v303_v40  ;;  %v305_v42 = vpop.permute.xlu0 %304 }
 0x2a4   :  { %1791 = vmatmul.msk.f32.gmra.mxu1 %vm221_vm11, %v305_v42 }
 0x319   :  { %v335_v45 = vpop.f32.mrf.mxu1 }
 0x31a   :  { %v336_v47 = vadd.f32 %v335_v45, %v2258_v43 }
 0x31c   :  { %v341_v48 = vsel %vm253_vm12, %v336_v47, -inf }
 0x31d   :  { %342 = vmax.xlane.f32.xlu0 %v341_v48 }
 0x321   :  { %v338_v52 = vpop.f32.mrf.mxu1 }
 0x322   :  { %v339_v53 = vadd.f32 %v338_v52, %v2265_v51 }
 0x324   :  { %v344_v54 = vsel %vm253_vm12, %v339_v53, -inf }
 0x325   :  { %345 = vmax.xlane.f32.xlu2 %v344_v54 }
 0x331   :  { %217 = vrot.lane.b32.xlu0 %v2234_v28, %s2058_s26 }
 0x339   :  { %585 = vrot.lane.b32.xlu0 %v2240_v31, %s2059_s30 }
 0x33d   :  { %219 = vrot.lane.b32.xlu2 %v2240_v31, %s2058_s26 }
 0x341   :  { %461 = vrot.lane.b32.xlu0 %v2240_v31, %s2060_s9 }
 0x345   :  { %583 = vrot.lane.b32.xlu2 %v2234_v28, %s2059_s30 }
 0x34d   :  { %459 = vrot.lane.b32.xlu2 %v2234_v28, %s2060_s9 }
 0x355   :  { %457 = vrot.lane.b32.xlu2 %v2240_v31, %s2061_s10 }
 0x390   :  { %v343_v55 = vpop.xlane.xlu0 %342 }
 0x391   :  { %v347_v56 = vsub.f32 %v336_v47, %v343_v55 }
 0x393   :  { %v349_v57 = vmul.f32 1.442695, %v347_v56 }
 0x395   :  { %1933 = vpow2.f32 %v349_v57 }
 0x398   :  { %v346_v58 = vpop.xlane.xlu2 %345 }
 0x399   :  { %v348_v59 = vsub.f32 %v339_v53, %v346_v58 }
 0x39b   :  { %v1934_v60 = vpop.eup %1933  ;;  %v351_v61 = vmul.f32 1.442695, %v348_v59 }
 0x39c   :  { %v353_v62 = vsel %vm253_vm12, %v1934_v60, 0.0 }
 0x39d   :  { %1935 = vpow2.f32 %v351_v61  ;;  %354 = vadd.xlane.f32.xlu1 %v353_v62 }
 0x3a0   :  { %v220_v63 = vpop.permute.xlu2 %219 }
 0x3a1   :  { %1784 = vmatpush.xpose.msk.msra.mxu3 %vm221_vm11, %v220_v63 }
 0x3a3   :  { %v1936_v0 = vpop.eup %1935  ;;  %v218_v1 = vpop.permute.xlu0 %217 }
 0x3a4   :  { %v356_v2 = vsel %vm253_vm12, %v1936_v0, 0.0 }
 0x3a5   :  { %357 = vadd.xlane.f32.xlu0 %v356_v2  ;;  %1785 = vmatpush.xpose.msk.msra.mxu3 %vm221_vm11, %v218_v1 }
 0x3a8   :  { %1786 = vmatmul.msk.f32.vlgmr.msra.gmra.mxu3 %vm221_vm11, %v2234_v28  ;;  %v584_v4 = vpop.permute.xlu2 %583 }
 0x3a9   :  { %446 = vmatpush.msrb.mxu3 %v186_v29 }
 0x3ab   :  { %447 = vmatpush.msrb.mxu3 %v2231_v25  ;;  %v586_v3 = vpop.permute.xlu0 %585 }
 0x3ac   :  { %1802 = vmatpush.xpose.msk.msra.mxu2 %vm221_vm11, %v586_v3 }
 0x3b0   :  { %1787 = vmatmul.msk.f32.gmra.mxu3 %vm221_vm11, %v2240_v31  ;;  %1803 = vmatpush.xpose.msk.msra.mxu2 %vm221_vm11, %v584_v4  ;;  %v460_v6 = vpop.permute.xlu2 %459 }
 0x3b3   :  { %v462_v5 = vpop.permute.xlu0 %461 }
 0x3b4   :  { %1796 = vmatpush.xpose.msk.msrb.mxu0 %vm221_vm11, %v462_v5 }
 0x3b6   :  { %579 = vrot.lane.b32.xlu1 %v2234_v28, %s2062_s11 }
 0x3b8   :  { %1797 = vmatpush.xpose.msk.msrb.mxu0 %vm221_vm11, %v460_v6  ;;  %v458_v45 = vpop.permute.xlu2 %457 }
 0x3b9   :  { %455 = vrot.lane.b32.xlu0 %v2234_v28, %s2061_s10 }
 0x3be   :  { %581 = vrot.lane.b32.xlu1 %v2240_v31, %s2062_s11 }
 0x410   :  { %v355_v7 = vpop.xlane.xlu1 %354 }
 0x411   :  { %1937 = vrcp.f32 %v355_v7  ;;  %v370_v12 = vand.u32 2147483648, %v355_v7  ;;  %v368_v14 = vand.u32 2147483647, %v355_v7  ;;  %vm364_vm14 = vweird.f32 %v355_v7 }
 0x413   :  { %v371_v18 = vor.u32 1.1754944e-38, %v370_v12  ;;  %vm369_vm1 = vcmp.eq.f32.partialorder %v368_v14, 8.507059e+37 }
 0x417   :  { %v1938_v8 = vpop.eup %1937 }
 0x418   :  { %v360_v9 = vmul.f32 %v1938_v8, %v355_v7  ;;  %v358_v10 = vpop.xlane.xlu0 %357  ;;  %vm365_vm13 = vweird.f32 %v1938_v8 }
 0x419   :  { %1939 = vrcp.f32 %v358_v10  ;;  %vm366_vm15 = vmor %vm364_vm14, %vm365_vm13  ;;  %v385_v26 = vand.u32 2147483648, %v358_v10  ;;  %v383_v28 = vand.u32 2147483647, %v358_v10  ;;  %vm379_vm4 = vweird.f32 %v358_v10 }
 0x41a   :  { %v361_v11 = vsub.f32 1.0, %v360_v9 }
 0x41b   :  { %v386_v30 = vor.u32 1.1754944e-38, %v385_v26  ;;  %vm384_vm6 = vcmp.eq.f32.partialorder %v383_v28, 8.507059e+37 }
 0x41c   :  { %v362_v13 = vmul.f32 %v1938_v8, %v361_v11 }
 0x41e   :  { %v363_v15 = vadd.f32 %v1938_v8, %v362_v13 }
 0x41f   :  { %v1940_v16 = vpop.eup %1939 }
 0x420   :  { %v375_v19 = vmul.f32 %v1940_v16, %v358_v10  ;;  %v367_v20 = vsel %vm366_vm15, %v1938_v8, %v363_v15  ;;  %vm380_vm2 = vweird.f32 %v1940_v16 }
 0x421   :  { %v372_v21 = vsel %vm369_vm1, %v371_v18, %v367_v20  ;;  %vm381_vm5 = vmor %vm379_vm4, %vm380_vm2 }
 0x422   :  { %v376_v22 = vsub.f32 1.0, %v375_v19  ;;  %v373_v25 = vmul.f32 %v1934_v60, %v372_v21 }
 0x424   :  { %v377_v27 = vmul.f32 %v1940_v16, %v376_v22  ;;  %1792 = vmatmul.msk.f32.vlgmr.msrb.gmra.mxu2 %vm253_vm12, %v373_v25 }
 0x426   :  { %v378_v29 = vadd.f32 %v1940_v16, %v377_v27 }
 0x428   :  { %v382_v31 = vsel %vm381_vm5, %v1940_v16, %v378_v29  ;;  %v580_v42 = vpop.permute.xlu1 %579 }
 0x429   :  { %v387_v33 = vsel %vm384_vm6, %v386_v30, %v382_v31 }
 0x42a   :  { %v388_v34 = vmul.f32 %v1936_v0, %v387_v33 }
 0x42b   :  { %v247_v35 = vpop.f32.mrf.mxu3  ;;  %v456_v36 = vpop.permute.xlu0 %455 }
 0x42c   :  { %v248_v37 = vadd.f32 %v247_v35, %v2258_v43  ;;  %1793 = vmatmul.msk.f32.gmra.mxu2 %vm253_vm12, %v388_v34  ;;  %1798 = vmatmul.msk.f32.vlgmr.msrb.gmra.mxu0 %vm221_vm11, %v456_v36 }
 0x42e   :  { %v254_v40 = vsel %vm253_vm12, %v248_v37, -inf }
 0x42f   :  { %255 = vmax.xlane.f32.xlu1 %v254_v40 }
 0x430   :  { %v582_v53 = vpop.permute.xlu1 %581 }
 0x433   :  { %v250_v47 = vpop.f32.mrf.mxu3 }
 0x434   :  { %v251_v48 = vadd.f32 %v250_v47, %v2265_v51  ;;  %1799 = vmatmul.msk.f32.gmra.mxu0 %vm221_vm11, %v458_v45  ;;  %1804 = vmatmul.msk.f32.vlgmr.msra.gmra.mxu2 %vm221_vm11, %v580_v42 }
 0x436   :  { %v257_v52 = vsel %vm253_vm12, %v251_v48, -inf }
 0x437   :  { %258 = vmax.xlane.f32.xlu0 %v257_v52 }
 0x43c   :  { %1805 = vmatmul.msk.f32.gmra.mxu2 %vm221_vm11, %v582_v53 }
 0x4a2   :  { %v256_v54 = vpop.xlane.xlu1 %255 }
 0x4a3   :  { %v260_v55 = vsub.f32 %v248_v37, %v256_v54 }
 0x4a5   :  { %v262_v56 = vmul.f32 1.442695, %v260_v55 }
 0x4a7   :  { %v2312_v57 = vpop.f32.mrf.mxu2  ;;  %1941 = vpow2.f32 %v262_v56 }
 0x4a9   :  { %v488_v58 = vpop.f32.mrf.mxu0 }
 0x4aa   :  { %v489_v59 = vadd.f32 %v488_v58, %v2258_v43  ;;  %v259_v0 = vpop.xlane.xlu0 %258 }
 0x4ab   :  { %v261_v3 = vsub.f32 %v251_v48, %v259_v0 }
 0x4ac   :  { %v494_v60 = vsel %vm253_vm12, %v489_v59, -inf }
 0x4ad   :  { %495 = vmax.xlane.f32.xlu1 %v494_v60  ;;  %v1942_v62 = vpop.eup %1941  ;;  %v264_v6 = vmul.f32 1.442695, %v261_v3 }
 0x4ae   :  { %v266_v63 = vsel %vm253_vm12, %v1942_v62, 0.0 }
 0x4af   :  { %v2316_v61 = vpop.f32.mrf.mxu2  ;;  %1943 = vpow2.f32 %v264_v6 }
 0x4b1   :  { %v491_v5 = vpop.f32.mrf.mxu0 }
 0x4b2   :  { %v492_v7 = vadd.f32 %v491_v5, %v2265_v51 }
 0x4b4   :  { %v497_v11 = vsel %vm253_vm12, %v492_v7, -inf }
 0x4b5   :  { %267 = vadd.xlane.f32.xlu1 %v266_v63  ;;  %v2325_v12 = vpop.eup %1943 }
 0x4b7   :  { %v612_v1 = vpop.f32.mrf.mxu2 }
 0x4b8   :  { %v613_v2 = vadd.f32 %v612_v1, %v2258_v43  ;;  %v269_v43 = vsel %vm253_vm12, %v2325_v12, 0.0 }
 0x4ba   :  { %v618_v4 = vsel %vm253_vm12, %v613_v2, -inf }
 0x4bb   :  { %619 = vmax.xlane.f32.xlu2 %v618_v4 }
 0x4bf   :  { %v615_v8 = vpop.f32.mrf.mxu2 }
 0x4c0   :  { %v616_v9 = vadd.f32 %v615_v8, %v2265_v51 }
 0x4c2   :  { %v621_v10 = vsel %vm253_vm12, %v616_v9, -inf }
 0x4c3   :  { %622 = vmax.xlane.f32.xlu0 %v621_v10  ;;  %498 = vmax.xlane.f32.xlu2 %v497_v11 }
 0x4cb   :  { %270 = vadd.xlane.f32.xlu0 %v269_v43 }
 0x520   :  { %v496_v13 = vpop.xlane.xlu1 %495 }
 0x521   :  { %v500_v14 = vsub.f32 %v489_v59, %v496_v13 }
 0x523   :  { %v502_v15 = vmul.f32 1.442695, %v500_v14 }
 0x525   :  { %1945 = vpow2.f32 %v502_v15 }
 0x528   :  { %v268_v16 = vpop.xlane.xlu1 %267 }
 0x529   :  { %1947 = vrcp.f32 %v268_v16  ;;  %v283_v27 = vand.u32 2147483648, %v268_v16  ;;  %v281_v29 = vand.u32 2147483647, %v268_v16  ;;  %vm277_vm8 = vweird.f32 %v268_v16 }
 0x52b   :  { %v2329_v51 = vpop.eup %1945  ;;  %v284_v34 = vor.u32 1.1754944e-38, %v283_v27  ;;  %vm282_vm10 = vcmp.eq.f32.partialorder %v281_v29, 8.507059e+37 }
 0x52c   :  { %v506_v18 = vsel %vm253_vm12, %v2329_v51, 0.0 }
 0x52d   :  { %507 = vadd.xlane.f32.xlu1 %v506_v18 }
 0x52e   :  { %v620_v19 = vpop.xlane.xlu2 %619 }
 0x52f   :  { %v1948_v20 = vpop.eup %1947  ;;  %v624_v21 = vsub.f32 %v613_v2, %v620_v19 }
 0x530   :  { %v273_v22 = vmul.f32 %v1948_v20, %v268_v16  ;;  %vm278_vm7 = vweird.f32 %v1948_v20 }
 0x531   :  { %v626_v25 = vmul.f32 1.442695, %v624_v21  ;;  %vm279_vm9 = vmor %vm277_vm8, %vm278_vm7 }
 0x532   :  { %v274_v26 = vsub.f32 1.0, %v273_v22 }
 0x533   :  { %1949 = vpow2.f32 %v626_v25 }
 0x534   :  { %v275_v28 = vmul.f32 %v1948_v20, %v274_v26 }
 0x536   :  { %v276_v30 = vadd.f32 %v1948_v20, %v275_v28  ;;  %v499_v31 = vpop.xlane.xlu2 %498  ;;  %v623_v33 = vpop.xlane.xlu0 %622 }
 0x537   :  { %v501_v35 = vsub.f32 %v492_v7, %v499_v31  ;;  %v625_v36 = vsub.f32 %v616_v9, %v623_v33 }
 0x538   :  { %v280_v37 = vsel %vm279_vm9, %v1948_v20, %v276_v30 }
 0x539   :  { %v2333_v40 = vpop.eup %1949  ;;  %v504_v42 = vmul.f32 1.442695, %v501_v35  ;;  %v628_v45 = vmul.f32 1.442695, %v625_v36  ;;  %v285_v47 = vsel %vm282_vm10, %v284_v34, %v280_v37 }
 0x53a   :  { %v630_v48 = vsel %vm253_vm12, %v2333_v40, 0.0  ;;  %v286_v52 = vmul.f32 %v1942_v62, %v285_v47 }
 0x53b   :  { %1951 = vpow2.f32 %v504_v42  ;;  %631 = vadd.xlane.f32.xlu2 %v630_v48 }
 0x53c   :  { %1953 = vpow2.f32 %v628_v45  ;;  %1794 = vmatmul.msk.f32.vlgmr.msrb.gmra.mxu3 %vm253_vm12, %v286_v52 }
 0x53e   :  { %v271_v53 = vpop.xlane.xlu0 %270 }
 0x53f   :  { %1955 = vrcp.f32 %v271_v53  ;;  %v298_v63 = vand.u32 2147483648, %v271_v53  ;;  %v296_v1 = vand.u32 2147483647, %v271_v53  ;;  %vm292_vm14 = vweird.f32 %v271_v53 }
 0x541   :  { %v2338_v54 = vpop.eup %1951  ;;  %v299_v3 = vor.u32 1.1754944e-38, %v298_v63  ;;  %vm297_vm1 = vcmp.eq.f32.partialorder %v296_v1, 8.507059e+37 }
 0x542   :  { %v2340_v55 = vpop.eup %1953  ;;  %v509_v56 = vsel %vm253_vm12, %v2338_v54, 0.0 }
 0x543   :  { %510 = vadd.xlane.f32.xlu2 %v509_v56  ;;  %v633_v58 = vsel %vm253_vm12, %v2340_v55, 0.0 }
 0x544   :  { %634 = vadd.xlane.f32.xlu0 %v633_v58 }
 0x545   :  { %v1956_v59 = vpop.eup %1955 }
 0x546   :  { %v288_v60 = vmul.f32 %v1956_v59, %v271_v53  ;;  %1883 = vrot.lane.b32.xlu1 %v2243_v32, %s2063_s12  ;;  %vm293_vm13 = vweird.f32 %v1956_v59 }
 0x547   :  { %vm294_vm15 = vmor %vm292_vm14, %vm293_vm13 }
 0x548   :  { %v289_v62 = vsub.f32 1.0, %v288_v60 }
 0x54a   :  { %v290_v0 = vmul.f32 %v1956_v59, %v289_v62 }
 0x54c   :  { %v291_v2 = vadd.f32 %v1956_v59, %v290_v0 }
 0x54e   :  { %v295_v4 = vsel %vm294_vm15, %v1956_v59, %v291_v2  ;;  %1893 = vrot.lane.b32.xlu1 %v1892_v49, %s2064_s13 }
 0x54f   :  { %v300_v5 = vsel %vm297_vm1, %v299_v3, %v295_v4 }
 0x550   :  { %v301_v6 = vmul.f32 %v2325_v12, %v300_v5 }
 0x552   :  { %1795 = vmatmul.msk.f32.gmra.mxu3 %vm253_vm12, %v301_v6 }
 0x558   :  { %1888 = vrot.lane.b32.xlu0 %v2243_v32, %s2064_s13 }
 0x5a0   :  { %v508_v7 = vpop.xlane.xlu1 %507 }
 0x5a1   :  { %1957 = vrcp.f32 %v508_v7  ;;  %v523_v42 = vand.u32 2147483648, %v508_v7  ;;  %vm517_vm10 = vweird.f32 %v508_v7  ;;  %v521_v47 = vand.u32 2147483647, %v508_v7 }
 0x5a3   :  { %v524_v58 = vor.u32 1.1754944e-38, %v523_v42  ;;  %vm522_vm1 = vcmp.eq.f32.partialorder %v521_v47, 8.507059e+37 }
 0x5a7   :  { %v1958_v9 = vpop.eup %1957 }
 0x5a8   :  { %v513_v41 = vmul.f32 %v1958_v9, %v508_v7  ;;  %vm518_vm8 = vweird.f32 %v1958_v9 }
 0x5a9   :  { %vm519_vm14 = vmor %vm517_vm10, %vm518_vm8 }
 0x5aa   :  { %v514_v18 = vsub.f32 1.0, %v513_v41 }
 0x5ac   :  { %v515_v28 = vmul.f32 %v1958_v9, %v514_v18 }
 0x5ae   :  { %v632_v8 = vpop.xlane.xlu2 %631  ;;  %v516_v36 = vadd.f32 %v1958_v9, %v515_v28 }
 0x5af   :  { %1959 = vrcp.f32 %v632_v8  ;;  %v647_v13 = vand.u32 2147483648, %v632_v8  ;;  %v645_v32 = vand.u32 2147483647, %v632_v8  ;;  %vm641_vm4 = vweird.f32 %v632_v8 }
 0x5b1   :  { %v648_v21 = vor.u32 1.1754944e-38, %v647_v13  ;;  %vm646_vm6 = vcmp.eq.f32.partialorder %v645_v32, 8.507059e+37 }
 0x5b5   :  { %v1960_v10 = vpop.eup %1959 }
 0x5b6   :  { %v637_v11 = vmul.f32 %v1960_v10, %v632_v8  ;;  %v2356_v43 = vpop.xlane.xlu2 %510  ;;  %vm642_vm2 = vweird.f32 %v1960_v10 }
 0x5b7   :  { %1961 = vrcp.f32 %v2356_v43  ;;  %v635_v38 = vpop.xlane.xlu0 %634  ;;  %vm643_vm5 = vmor %vm641_vm4, %vm642_vm2  ;;  %v538_v1 = vand.u32 2147483648, %v2356_v43  ;;  %vm532_vm4 = vweird.f32 %v2356_v43  ;;  %v536_v4 = vand.u32 2147483647, %v2356_v43 }
 0x5b8   :  { %v638_v49 = vsub.f32 1.0, %v637_v11  ;;  %1963 = vrcp.f32 %v635_v38  ;;  %v1884_v12 = vpop.permute.xlu1 %1883  ;;  %v662_v33 = vand.u32 2147483648, %v635_v38  ;;  %v660_v35 = vand.u32 2147483647, %v635_v38 }
 0x5b9   :  { %v1885_v14 = vunpack.i.l.bf16 %v1884_v12  ;;  %v1886_v16 = vunpack.i.h.bf16 %v1884_v12  ;;  %vm656_vm9 = vweird.f32 %v635_v38  ;;  %v539_v5 = vor.u32 1.1754944e-38, %v538_v1 }
 0x5ba   :  { %v639_v15 = vmul.f32 %v1960_v10, %v638_v49  ;;  %v663_v48 = vor.u32 1.1754944e-38, %v662_v33  ;;  %vm661_vm15 = vcmp.eq.f32.partialorder %v660_v35, 8.507059e+37 }
 0x5bb   :  { %692 = vmatpush.msra.mxu3 %v1885_v14 }
 0x5bc   :  { %v640_v19 = vadd.f32 %v1960_v10, %v639_v15 }
 0x5bd   :  { %v1962_v20 = vpop.eup %1961  ;;  %693 = vmatpush.msra.mxu3 %v1886_v16 }
 0x5be   :  { %v1964_v22 = vpop.eup %1963  ;;  %v644_v25 = vsel %vm643_vm5, %v1960_v10, %v640_v19  ;;  %v528_v29 = vmul.f32 %v1962_v20, %v2356_v43  ;;  %vm533_vm2 = vweird.f32 %v1962_v20  ;;  %v703_v43 = vperm.slane %v2229_v24, 1 }
 0x5bf   :  { %v649_v26 = vsel %vm646_vm6, %v648_v21, %v644_v25  ;;  %v652_v27 = vmul.f32 %v1964_v22, %v635_v38  ;;  %vm657_vm7 = vweird.f32 %v1964_v22  ;;  %vm534_vm5 = vmor %vm532_vm4, %vm533_vm2  ;;  %vm537_vm6 = vcmp.eq.f32.partialorder %v536_v4, 8.507059e+37  ;;  %v449_v8 = vpop.f32.mrf.mxu3 }
 0x5c0   :  { %v650_v30 = vmul.f32 %v2333_v40, %v649_v26  ;;  %v529_v37 = vsub.f32 1.0, %v528_v29  ;;  %vm658_vm13 = vmor %vm656_vm9, %vm657_vm7  ;;  %v520_v40 = vsel %vm519_vm14, %v1958_v9, %v516_v36  ;;  %v450_v10 = vadd.f32 %v449_v8, %v2312_v57 }
 0x5c1   :  { %v653_v31 = vsub.f32 1.0, %v652_v27  ;;  %v525_v62 = vsel %vm522_vm1, %v524_v58, %v520_v40  ;;  %v761_v4 = vperm.slane %v2229_v24, 3 }
 0x5c2   :  { %1806 = vmatmul.msk.f32.vlgmr.msra.gmra.mxu3 %vm253_vm12, %v650_v30  ;;  %v530_v53 = vmul.f32 %v1962_v20, %v529_v37  ;;  %v526_v3 = vmul.f32 %v2329_v51, %v525_v62 }
 0x5c3   :  { %v654_v34 = vmul.f32 %v1964_v22, %v653_v31 }
 0x5c4   :  { %v531_v0 = vadd.f32 %v1962_v20, %v530_v53 }
 0x5c5   :  { %v655_v45 = vadd.f32 %v1964_v22, %v654_v34 }
 0x5c7   :  { %v659_v52 = vsel %vm658_vm13, %v1964_v22, %v655_v45  ;;  %v1894_v22 = vpop.permute.xlu1 %1893 }
 0x5c8   :  { %v664_v56 = vsel %vm661_vm15, %v663_v48, %v659_v52  ;;  %v1895_v25 = vunpack.i.l.bf16 %v1894_v22  ;;  %v1896_v26 = vunpack.i.h.bf16 %v1894_v22 }
 0x5c9   :  { %v665_v59 = vmul.f32 %v2340_v55, %v664_v56  ;;  %v535_v55 = vsel %vm534_vm5, %v1962_v20, %v531_v0  ;;  %v758_v0 = vperm.slane %v2229_v24, 2 }
 0x5ca   :  { %v1889_v60 = vpop.permute.xlu0 %1888  ;;  %v540_v6 = vsel %vm537_vm6, %v539_v5, %v535_v55  ;;  %799 = vmatpush.msra.mxu0 %v1895_v25 }
 0x5cb   :  { %v1890_v63 = vunpack.i.l.bf16 %v1889_v60  ;;  %1807 = vmatmul.msk.f32.gmra.mxu3 %vm253_vm12, %v665_v59  ;;  %v1891_v2 = vunpack.i.h.bf16 %v1889_v60  ;;  %v541_v7 = vmul.f32 %v2338_v54, %v540_v6 }
 0x5cc   :  { %800 = vmatpush.msra.mxu0 %v1896_v26 }
 0x5cd   :  { %568 = vmatpush.msra.mxu1 %v1890_v63 }
 0x5cf   :  { %569 = vmatpush.msra.mxu1 %v1891_v2 }
 0x5d0   :  { %1800 = vmatmul.msk.f32.vlgmr.msra.gmra.mxu1 %vm253_vm12, %v526_v3 }
 0x5d5   :  { %v452_v9 = vpop.f32.mrf.mxu3 }
 0x5d6   :  { %v453_v12 = vadd.f32 %v452_v9, %v2316_v61 }
 0x5d8   :  { %1801 = vmatmul.msk.f32.gmra.mxu1 %vm253_vm12, %v541_v7 }
 0x645   :  { %v695_v11 = vpop.f32.mrf.mxu3 }
 0x64d   :  { %v571_v51 = vpop.f32.mrf.mxu1 }
 0x64e   :  { %v577_v38 = vadd.f32 %v571_v51, %v450_v10  ;;  %v698_v32 = vpop.f32.mrf.mxu3 }
 0x650   :  { %v701_v41 = vadd.f32 %v695_v11, %v577_v38 }
 0x652   :  { %v704_v49 = vadd.f32 %v703_v43, %v701_v41  ;;  %v835_v41 = vld [vmem:[%s2752_s4 + $0x38] sm:$0xff] }
 0x653   :  { %851 = vmatpush.msrb.mxu1 %v835_v41 }
 0x654   :  { %v706_v13 = vadd.f32 %v704_v49, %v2213_v17  ;;  %v834_v49 = vld [vmem:[%s2752_s4 + $0x30] sm:$0xff] }
 0x655   :  { %v574_v14 = vpop.f32.mrf.mxu1  ;;  %852 = vmatpush.msrb.mxu1 %v834_v49 }
 0x656   :  { %v578_v15 = vadd.f32 %v574_v14, %v453_v12  ;;  %v708_v54 = vsel %vm85_vm3, %v706_v13, 0.0  ;;  %v716_v57 = vmul.f32 %v706_v13, %v706_v13  ;;  %v833_v12 = vld [vmem:[%s2752_s4 + $0x28] sm:$0xff]  ;;  %v831_v14 = vld [vmem:[%s2752_s4 + $0x18] sm:$0xff] }
 0x657   :  { %709 = vadd.xlane.f32.xlu2 %v708_v54  ;;  %853 = vmatpush.msrb.mxu1 %v833_v12  ;;  %v829_v54 = vld [vmem:[%s2752_s4 + $0x8] sm:$0xff] }
 0x658   :  { %v702_v16 = vadd.f32 %v698_v32, %v578_v15  ;;  %v718_v20 = vsel %vm85_vm3, %v716_v57, 0.0  ;;  %v830_v15 = vld [vmem:[%s2752_s4 + $0x10] sm:$0xff]  ;;  %v828_v32 = vld [vmem:[%s2752_s4] sm:$0xff] }
 0x65a   :  { %v705_v18 = vadd.f32 %v703_v43, %v702_v16  ;;  %v764_v16 = vperm.slane %v2229_v24, 4 }
 0x65c   :  { %v2377_v19 = vadd.f32 %v705_v18, %v2220_v23 }
 0x65e   :  { %v717_v21 = vmul.f32 %v2377_v19, %v2377_v19  ;;  %v711_v61 = vsel %vm85_vm3, %v2377_v19, 0.0 }
 0x65f   :  { %719 = vadd.xlane.f32.xlu2 %v718_v20 }
 0x660   :  { %v721_v17 = vsel %vm85_vm3, %v717_v21, 0.0 }
 0x661   :  { %722 = vadd.xlane.f32.xlu0 %v721_v17 }
 0x667   :  { %712 = vadd.xlane.f32.xlu2 %v711_v61 }
 0x67f   :  { %1898 = vrot.lane.b32.xlu2 %v1897_v50, %s2064_s13 }
 0x6ca   :  { %v710_v23 = vpop.xlane.xlu2 %709 }
 0x6cb   :  { %v714_v27 = vmul.f32 %v710_v23, %v2171_v39 }
 0x6cd   :  { %v726_v29 = vmul.f32 %v714_v27, %v714_v27  ;;  %v732_v63 = vsub.f32 %v706_v13, %v714_v27  ;;  %v832_v13 = vld [vmem:[%s2752_s4 + $0x20] sm:$0xff] }
 0x6ce   :  { %854 = vmatpush.msrb.mxu1 %v832_v13 }
 0x6d0   :  { %855 = vmatpush.msrb.mxu1 %v831_v14 }
 0x6d2   :  { %v720_v28 = vpop.xlane.xlu2 %719  ;;  %856 = vmatpush.msrb.mxu1 %v830_v15 }
 0x6d3   :  { %v724_v30 = vmul.f32 %v720_v28, %v2171_v39 }
 0x6d4   :  { %v723_v35 = vpop.xlane.xlu0 %722  ;;  %857 = vmatpush.msrb.mxu1 %v829_v54 }
 0x6d5   :  { %v728_v31 = vsub.f32 %v724_v30, %v726_v29  ;;  %v725_v46 = vmul.f32 %v723_v35, %v2171_v39 }
 0x6d6   :  { %858 = vmatpush.msrb.mxu1 %v828_v32 }
 0x6d7   :  { %v730_v33 = vmax.f32 %v728_v31, 0.0 }
 0x6d9   :  { %v734_v34 = vadd.f32 1e-12, %v730_v33 }
 0x6da   :  { %v713_v36 = vpop.xlane.xlu2 %712 }
 0x6db   :  { %1965 = vrsqrt.f32 %v734_v34  ;;  %v715_v44 = vmul.f32 %v713_v36, %v2171_v39  ;;  %vm742_vm8 = vweird.f32 %v734_v34 }
 0x6dd   :  { %v727_v50 = vmul.f32 %v715_v44, %v715_v44  ;;  %v733_v10 = vsub.f32 %v2377_v19, %v715_v44 }
 0x6df   :  { %v729_v37 = vsub.f32 %v725_v46, %v727_v50  ;;  %v836_v50 = vperm.slane %v2229_v24, 5 }
 0x6e1   :  { %v1966_v42 = vpop.eup %1965  ;;  %v731_v45 = vmax.f32 %v729_v37, 0.0 }
 0x6e2   :  { %v737_v47 = vmul.f32 %v1966_v42, %v734_v34  ;;  %v1899_v48 = vpop.permute.xlu2 %1898  ;;  %vm743_vm7 = vweird.f32 %v1966_v42 }
 0x6e3   :  { %v735_v52 = vadd.f32 1e-12, %v731_v45  ;;  %v1901_v40 = vunpack.i.h.bf16 %v1899_v48  ;;  %v1900_v53 = vunpack.i.l.bf16 %v1899_v48  ;;  %vm744_vm9 = vmor %vm742_vm8, %vm743_vm7 }
 0x6e4   :  { %v738_v56 = vmul.f32 %v1966_v42, %v737_v47 }
 0x6e5   :  { %1967 = vrsqrt.f32 %v735_v52  ;;  %801 = vmatpush.msra.mxu0 %v1900_v53  ;;  %vm752_vm13 = vweird.f32 %v735_v52 }
 0x6e6   :  { %v739_v58 = vmul.f32 0.5, %v738_v56 }
 0x6e7   :  { %802 = vmatpush.msra.mxu0 %v1901_v40 }
 0x6e8   :  { %v740_v59 = vsub.f32 1.5, %v739_v58 }
 0x6ea   :  { %v741_v60 = vmul.f32 %v1966_v42, %v740_v59 }
 0x6eb   :  { %v1968_v62 = vpop.eup %1967 }
 0x6ec   :  { %v745_v1 = vsel %vm744_vm9, %v1966_v42, %v741_v60  ;;  %v747_v2 = vmul.f32 %v1968_v62, %v735_v52  ;;  %vm753_vm10 = vweird.f32 %v1968_v62  ;;  %v1818_v60 = vld [vmem:[%s2751_s3 + $0x70] sm:$0xff] }
 0x6ed   :  { %v756_v3 = vmul.f32 %v745_v1, %v732_v63  ;;  %vm754_vm14 = vmor %vm752_vm13, %vm753_vm10  ;;  %953 = vmatpush.msrb.mxu2 %v1818_v60  ;;  %v1816_v63 = vld [vmem:[%s2751_s3 + $0x60] sm:$0xff] }
 0x6ee   :  { %v748_v55 = vmul.f32 %v1968_v62, %v747_v2  ;;  %v1814_v2 = vld [vmem:[%s2751_s3 + $0x50] sm:$0xff] }
 0x6ef   :  { %v759_v5 = vmul.f32 %v758_v0, %v756_v3  ;;  %954 = vmatpush.msrb.mxu2 %v1816_v63  ;;  %v2464_v3 = vld [vmem:[%s2751_s3 + $0x58] sm:$0xff]  ;;  %v2524_v63 = vld [vmem:[%s2749_s1] sm:$0xff] }
 0x6f0   :  { %v749_v6 = vmul.f32 0.5, %v748_v55 }
 0x6f1   :  { %v762_v7 = vadd.f32 %v761_v4, %v759_v5  ;;  %955 = vmatpush.msrb.mxu2 %v1814_v2  ;;  %v1812_v5 = vld [vmem:[%s2751_s3 + $0x40] sm:$0xff] }
 0x6f2   :  { %v750_v8 = vsub.f32 1.5, %v749_v6  ;;  %v2474_v6 = vld [vmem:[%s2751_s3 + $0x48] sm:$0xff] }
 0x6f3   :  { %1808 = vmatmul.msk.f32.vlgmr.msra.gmra.mxu0 %vm85_vm3, %v762_v7  ;;  %956 = vmatpush.msrb.mxu2 %v1812_v5 }
 0x6f4   :  { %v751_v9 = vmul.f32 %v1968_v62, %v750_v8 }
 0x6f6   :  { %v755_v11 = vsel %vm754_vm14, %v1968_v62, %v751_v9  ;;  %v2446_v62 = vld [vmem:[%s2751_s3 + $0x78] sm:$0xff] }
 0x6f7   :  { %v757_v51 = vmul.f32 %v755_v11, %v733_v10  ;;  %976 = vmatpush.msrb.mxu3 %v2446_v62 }
 0x6f9   :  { %v760_v38 = vmul.f32 %v758_v0, %v757_v51  ;;  %v2455_v0 = vld [vmem:[%s2751_s3 + $0x68] sm:$0xff] }
 0x6fa   :  { %977 = vmatpush.msrb.mxu3 %v2455_v0 }
 0x6fb   :  { %v763_v43 = vadd.f32 %v761_v4, %v760_v38  ;;  %v1917_v38 = vpack.i.bf16 %v2455_v0, %v2446_v62 }
 0x6fc   :  { %978 = vmatpush.msrb.mxu3 %v2464_v3 }
 0x6fd   :  { %1809 = vmatmul.msk.f32.gmra.mxu0 %vm85_vm3, %v763_v43 }
 0x6fe   :  { %979 = vmatpush.msrb.mxu3 %v2474_v6 }
 0x770   :  { %v804_v18 = vpop.f32.mrf.mxu0 }
 0x771   :  { %v805_v57 = vadd.f32 %v804_v18, %v764_v16 }
 0x773   :  { %v810_v19 = vmul.f32 %v805_v57, %v805_v57 }
 0x775   :  { %v812_v20 = vmul.f32 %v810_v19, %v805_v57 }
 0x777   :  { %v814_v21 = vmul.f32 0.044715, %v812_v20 }
 0x779   :  { %v816_v17 = vadd.f32 %v814_v21, %v805_v57 }
 0x77a   :  { %v807_v61 = vpop.f32.mrf.mxu0 }
 0x77b   :  { %v818_v23 = vmul.f32 0.7978846, %v816_v17  ;;  %v808_v22 = vadd.f32 %v807_v61, %v764_v16  ;;  %v2023_v17 = vld [vmem:[%s2753_s5] sm:$0xff] }
 0x77c   :  { %v918_v61 = vperm.slane %v2023_v17, 6 }
 0x77d   :  { %1969 = vtanh.f32 %v818_v23  ;;  %v811_v25 = vmul.f32 %v808_v22, %v808_v22 }
 0x77f   :  { %v813_v26 = vmul.f32 %v811_v25, %v808_v22  ;;  %v921_v25 = vperm.slane %v2023_v17, 7 }
 0x781   :  { %v815_v27 = vmul.f32 0.044715, %v813_v26 }
 0x783   :  { %v1970_v28 = vpop.eup %1969  ;;  %v817_v29 = vadd.f32 %v815_v27, %v808_v22 }
 0x784   :  { %v822_v30 = vadd.f32 1.0, %v1970_v28 }
 0x785   :  { %v819_v31 = vmul.f32 0.7978846, %v817_v29 }
 0x786   :  { %v824_v33 = vmul.f32 0.5, %v822_v30 }
 0x787   :  { %1971 = vtanh.f32 %v819_v31 }
 0x788   :  { %v826_v34 = vmul.f32 %v824_v33, %v805_v57 }
 0x78a   :  { %1810 = vmatmul.msk.f32.vlgmr.msrb.gmra.mxu1 %vm55_vm0, %v826_v34 }
 0x78d   :  { %v1972_v35 = vpop.eup %1971 }
 0x78e   :  { %v823_v36 = vadd.f32 1.0, %v1972_v35 }
 0x790   :  { %v825_v44 = vmul.f32 0.5, %v823_v36 }
 0x792   :  { %v827_v46 = vmul.f32 %v825_v44, %v808_v22 }
 0x794   :  { %1811 = vmatmul.msk.f32.gmra.mxu1 %vm55_vm0, %v827_v46 }
 0x807   :  { %v860_v37 = vpop.f32.mrf.mxu1 }
 0x808   :  { %v861_v42 = vadd.f32 %v860_v37, %v836_v50  ;;  %v2504_v37 = vld [vmem:[%s2753_s5 + $0x8] sm:$0xff] }
 0x80a   :  { %v2426_v45 = vadd.f32 %v861_v42, %v762_v7  ;;  %v987_v42 = vperm.slane %v2504_v37, 0 }
 0x80c   :  { %v868_v47 = vsel %vm85_vm3, %v2426_v45, 0.0  ;;  %v876_v48 = vmul.f32 %v2426_v45, %v2426_v45 }
 0x80d   :  { %869 = vadd.xlane.f32.xlu1 %v868_v47 }
 0x80e   :  { %v878_v52 = vsel %vm85_vm3, %v876_v48, 0.0 }
 0x80f   :  { %879 = vadd.xlane.f32.xlu2 %v878_v52 }
 0x811   :  { %v863_v40 = vpop.f32.mrf.mxu1 }
 0x812   :  { %v864_v53 = vadd.f32 %v863_v40, %v836_v50 }
 0x814   :  { %v2433_v56 = vadd.f32 %v864_v53, %v763_v43  ;;  %v1922_v43 = vpack.i.bf16 %v2474_v6, %v2464_v3 }
 0x816   :  { %v871_v24 = vsel %vm85_vm3, %v2433_v56, 0.0  ;;  %v877_v58 = vmul.f32 %v2433_v56, %v2433_v56 }
 0x817   :  { %872 = vadd.xlane.f32.xlu0 %v871_v24 }
 0x818   :  { %v881_v59 = vsel %vm85_vm3, %v877_v58, 0.0 }
 0x81f   :  { %882 = vadd.xlane.f32.xlu0 %v881_v59 }
 0x880   :  { %v870_v1 = vpop.xlane.xlu1 %869 }
 0x881   :  { %v874_v4 = vmul.f32 %v870_v1, %v2171_v39 }
 0x882   :  { %v880_v55 = vpop.xlane.xlu2 %879 }
 0x883   :  { %v886_v7 = vmul.f32 %v874_v4, %v874_v4  ;;  %v884_v8 = vmul.f32 %v880_v55, %v2171_v39  ;;  %v892_v21 = vsub.f32 %v2426_v45, %v874_v4  ;;  %v2531_v55 = vld [vmem:[%s2749_s1 + $0x8] sm:$0xff] }
 0x885   :  { %v888_v9 = vsub.f32 %v884_v8, %v886_v7 }
 0x887   :  { %v890_v10 = vmax.f32 %v888_v9, 0.0 }
 0x889   :  { %v894_v11 = vadd.f32 1e-12, %v890_v10 }
 0x88a   :  { %v873_v51 = vpop.xlane.xlu0 %872 }
 0x88b   :  { %1973 = vrsqrt.f32 %v894_v11  ;;  %v875_v41 = vmul.f32 %v873_v51, %v2171_v39  ;;  %vm902_vm1 = vweird.f32 %v894_v11 }
 0x88d   :  { %v887_v14 = vmul.f32 %v875_v41, %v875_v41  ;;  %v893_v35 = vsub.f32 %v2433_v56, %v875_v41 }
 0x891   :  { %v1974_v49 = vpop.eup %1973 }
 0x892   :  { %v897_v12 = vmul.f32 %v1974_v49, %v894_v11  ;;  %v883_v13 = vpop.xlane.xlu0 %882  ;;  %vm903_vm15 = vweird.f32 %v1974_v49 }
 0x893   :  { %v885_v15 = vmul.f32 %v883_v13, %v2171_v39  ;;  %vm904_vm2 = vmor %vm902_vm1, %vm903_vm15 }
 0x894   :  { %v898_v54 = vmul.f32 %v1974_v49, %v897_v12 }
 0x895   :  { %v889_v32 = vsub.f32 %v885_v15, %v887_v14 }
 0x896   :  { %v899_v16 = vmul.f32 0.5, %v898_v54 }
 0x897   :  { %v891_v18 = vmax.f32 %v889_v32, 0.0 }
 0x898   :  { %v900_v57 = vsub.f32 1.5, %v899_v16 }
 0x899   :  { %v895_v19 = vadd.f32 1e-12, %v891_v18 }
 0x89a   :  { %v901_v20 = vmul.f32 %v1974_v49, %v900_v57 }
 0x89b   :  { %1975 = vrsqrt.f32 %v895_v19  ;;  %vm912_vm5 = vweird.f32 %v895_v19 }
 0x89c   :  { %v905_v23 = vsel %vm904_vm2, %v1974_v49, %v901_v20 }
 0x89d   :  { %v916_v22 = vmul.f32 %v905_v23, %v892_v21 }
 0x89f   :  { %v919_v26 = vmul.f32 %v918_v61, %v916_v22 }
 0x8a1   :  { %v1976_v27 = vpop.eup %1975  ;;  %v2488_v28 = vadd.f32 %v921_v25, %v919_v26 }
 0x8a2   :  { %v907_v29 = vmul.f32 %v1976_v27, %v895_v19  ;;  %vm913_vm4 = vweird.f32 %v1976_v27 }
 0x8a3   :  { %1821 = vmatmul.msk.f32.vlgmr.msrb.gmra.mxu2 %vm85_vm3, %v2488_v28  ;;  %1823 = vmatmul.msk.f32.vlgmr.msrb.gmra.mxu3 %vm85_vm3, %v2488_v28  ;;  %vm914_vm6 = vmor %vm912_vm5, %vm913_vm4 }
 0x8a4   :  { %v908_v30 = vmul.f32 %v1976_v27, %v907_v29 }
 0x8a6   :  { %v909_v31 = vmul.f32 0.5, %v908_v30 }
 0x8a8   :  { %v910_v33 = vsub.f32 1.5, %v909_v31 }
 0x8aa   :  { %v911_v34 = vmul.f32 %v1976_v27, %v910_v33 }
 0x8ac   :  { %v915_v36 = vsel %vm914_vm6, %v1976_v27, %v911_v34 }
 0x8ad   :  { %v917_v44 = vmul.f32 %v915_v36, %v893_v35 }
 0x8af   :  { %v920_v46 = vmul.f32 %v918_v61, %v917_v44 }
 0x8b1   :  { %v2495_v50 = vadd.f32 %v921_v25, %v920_v46 }
 0x8b3   :  { %1822 = vmatmul.msk.f32.gmra.mxu2 %vm85_vm3, %v2495_v50  ;;  %1824 = vmatmul.msk.f32.gmra.mxu3 %vm85_vm3, %v2495_v50 }
 0x926   :  { %v981_v45 = vpop.f32.mrf.mxu3  ;;  %v958_v48 = vpop.f32.mrf.mxu2 }
 0x927   :  { %v2507_v47 = vadd.f32 %v987_v42, %v981_v45 }
 0x929   :  { %1075 = vrot.lane.b32.xlu2 %v2507_v47, %s2056_s0  ;;  %1079 = vrot.lane.b32.xlu0 %v2507_v47, %s2057_s25 }
 0x931   :  { %992 = vrot.lane.b32.xlu2 %v2507_v47, %s2058_s26 }
 0x936   :  { %v961_v52 = vpop.f32.mrf.mxu2  ;;  %v984_v40 = vpop.f32.mrf.mxu3 }
 0x937   :  { %v989_v53 = vadd.f32 %v987_v42, %v984_v40  ;;  %1219 = vmatpush.msra.mxu3 %v961_v52  ;;  %v2536_v8 = vpack.i.bf16 %v958_v48, %v961_v52 }
 0x939   :  { %1077 = vrot.lane.b32.xlu0 %v989_v53, %s2056_s0  ;;  %1081 = vrot.lane.b32.xlu1 %v989_v53, %s2057_s25 }
 0x93a   :  { %1220 = vmatpush.msra.mxu3 %v958_v48 }
 0x983   :  { %v1076_v58 = vpop.permute.xlu2 %1075 }
 0x98b   :  { %v993_v16 = vpop.permute.xlu2 %992 }
 0x99b   :  { %v1080_v24 = vpop.permute.xlu0 %1079 }
 0x9ab   :  { %v1082_v56 = vpop.permute.xlu1 %1081  ;;  %v1078_v59 = vpop.permute.xlu0 %1077 }
 0x9ac   :  { %1829 = vmatpush.xpose.msk.msra.mxu1 %vm221_vm11, %v1082_v56 }
 0x9b0   :  { %1830 = vmatpush.xpose.msk.msra.mxu1 %vm221_vm11, %v1080_v24 }
 0x9b3   :  { %1831 = vmatmul.msk.f32.vlgmr.msra.gmra.mxu1 %vm221_vm11, %v1076_v58 }
 0x9bb   :  { %1832 = vmatmul.msk.f32.gmra.mxu1 %vm221_vm11, %v1078_v59 }
 0xa30   :  { %v1108_v60 = vpop.f32.mrf.mxu1 }
 0xa31   :  { %v1109_v1 = vadd.f32 %v2524_v63, %v1108_v60 }
 0xa33   :  { %v1114_v2 = vsel %vm253_vm12, %v1109_v1, -inf }
 0xa34   :  { %1115 = vmax.xlane.f32.xlu1 %v1114_v2 }
 0xa38   :  { %v1111_v4 = vpop.f32.mrf.mxu1 }
 0xa39   :  { %v1112_v5 = vadd.f32 %v2531_v55, %v1111_v4 }
 0xa3b   :  { %v1117_v7 = vsel %vm253_vm12, %v1112_v5, -inf }
 0xa3c   :  { %1118 = vmax.xlane.f32.xlu0 %v1117_v7 }
 0xa4d   :  { %994 = vrot.lane.b32.xlu1 %v989_v53, %s2058_s26 }
 0xa50   :  { %1903 = vrot.lane.b32.xlu0 %v2536_v8, %s2058_s26 }
 0xa55   :  { %1356 = vrot.lane.b32.xlu1 %v2507_v47, %s2059_s30 }
 0xa58   :  { %1358 = vrot.lane.b32.xlu0 %v989_v53, %s2059_s30 }
 0xa60   :  { %1352 = vrot.lane.b32.xlu0 %v2507_v47, %s2062_s11 }
 0xa68   :  { %1354 = vrot.lane.b32.xlu0 %v989_v53, %s2062_s11 }
 0xaa7   :  { %v1116_v9 = vpop.xlane.xlu1 %1115 }
 0xaa8   :  { %v1120_v10 = vsub.f32 %v1109_v1, %v1116_v9 }
 0xaaa   :  { %v1122_v11 = vmul.f32 1.442695, %v1120_v10 }
 0xaac   :  { %1977 = vpow2.f32 %v1122_v11 }
 0xaaf   :  { %v1119_v51 = vpop.xlane.xlu0 %1118 }
 0xab0   :  { %v1121_v41 = vsub.f32 %v1112_v5, %v1119_v51 }
 0xab2   :  { %v1978_v49 = vpop.eup %1977  ;;  %v1124_v12 = vmul.f32 1.442695, %v1121_v41 }
 0xab3   :  { %v1126_v13 = vsel %vm253_vm12, %v1978_v49, 0.0 }
 0xab4   :  { %1979 = vpow2.f32 %v1124_v12  ;;  %1127 = vadd.xlane.f32.xlu2 %v1126_v13 }
 0xaba   :  { %v1980_v14 = vpop.eup %1979 }
 0xabb   :  { %v1129_v15 = vsel %vm253_vm12, %v1980_v14, 0.0 }
 0xabc   :  { %1130 = vadd.xlane.f32.xlu1 %v1129_v15 }
 0xabf   :  { %v995_v54 = vpop.permute.xlu1 %994 }
 0xac0   :  { %1825 = vmatpush.xpose.msk.msrb.mxu0 %vm221_vm11, %v995_v54 }
 0xac2   :  { %v1904_v32 = vpop.permute.xlu0 %1903 }
 0xac3   :  { %v1905_v18 = vunpack.i.l.bf16 %v1904_v32  ;;  %v1906_v57 = vunpack.i.h.bf16 %v1904_v32 }
 0xac4   :  { %1826 = vmatpush.xpose.msk.msrb.mxu0 %vm221_vm11, %v993_v16 }
 0xac5   :  { %1190 = vmatpush.msra.mxu2 %v1905_v18 }
 0xac7   :  { %1827 = vmatmul.msk.f32.vlgmr.msrb.gmra.mxu0 %vm221_vm11, %v2507_v47  ;;  %1191 = vmatpush.msra.mxu2 %v1906_v57  ;;  %v1357_v20 = vpop.permute.xlu1 %1356 }
 0xaca   :  { %v1359_v19 = vpop.permute.xlu0 %1358 }
 0xacb   :  { %1843 = vmatpush.xpose.msk.msrb.mxu2 %vm221_vm11, %v1359_v19 }
 0xacc   :  { %1234 = vrot.lane.b32.xlu2 %v989_v53, %s2060_s9 }
 0xacf   :  { %1828 = vmatmul.msk.f32.gmra.mxu0 %vm221_vm11, %v989_v53  ;;  %1844 = vmatpush.xpose.msk.msrb.mxu2 %vm221_vm11, %v1357_v20 }
 0xad2   :  { %v1353_v1 = vpop.permute.xlu0 %1352 }
 0xad4   :  { %1228 = vrot.lane.b32.xlu2 %v2507_v47, %s2061_s10 }
 0xad5   :  { %1232 = vrot.lane.b32.xlu1 %v2507_v47, %s2060_s9 }
 0xada   :  { %v1355_v9 = vpop.permute.xlu0 %1354 }
 0xadd   :  { %1230 = vrot.lane.b32.xlu1 %v989_v53, %s2061_s10 }
 0xb27   :  { %v1128_v21 = vpop.xlane.xlu2 %1127 }
 0xb28   :  { %1981 = vrcp.f32 %v1128_v21  ;;  %v1143_v26 = vand.u32 2147483648, %v1128_v21  ;;  %v1141_v29 = vand.u32 2147483647, %v1128_v21  ;;  %vm1137_vm8 = vweird.f32 %v1128_v21 }
 0xb2a   :  { %v1144_v33 = vor.u32 1.1754944e-38, %v1143_v26  ;;  %vm1142_vm10 = vcmp.eq.f32.partialorder %v1141_v29, 8.507059e+37 }
 0xb2e   :  { %v1982_v17 = vpop.eup %1981 }
 0xb2f   :  { %v1133_v61 = vmul.f32 %v1982_v17, %v1128_v21  ;;  %v1235_v23 = vpop.permute.xlu2 %1234  ;;  %v1131_v22 = vpop.xlane.xlu1 %1130  ;;  %vm1138_vm7 = vweird.f32 %v1982_v17 }
 0xb30   :  { %1983 = vrcp.f32 %v1131_v22  ;;  %1837 = vmatpush.xpose.msk.msra.mxu0 %vm221_vm11, %v1235_v23  ;;  %vm1139_vm9 = vmor %vm1137_vm8, %vm1138_vm7  ;;  %v1158_v42 = vand.u32 2147483648, %v1131_v22  ;;  %v1156_v47 = vand.u32 2147483647, %v1131_v22  ;;  %vm1152_vm14 = vweird.f32 %v1131_v22 }
 0xb31   :  { %v1134_v25 = vsub.f32 1.0, %v1133_v61 }
 0xb32   :  { %v1159_v52 = vor.u32 1.1754944e-38, %v1158_v42  ;;  %vm1157_vm1 = vcmp.eq.f32.partialorder %v1156_v47, 8.507059e+37 }
 0xb33   :  { %v1135_v27 = vmul.f32 %v1982_v17, %v1134_v25 }
 0xb35   :  { %v1136_v30 = vadd.f32 %v1982_v17, %v1135_v27 }
 0xb36   :  { %v1984_v31 = vpop.eup %1983 }
 0xb37   :  { %v1140_v34 = vsel %vm1139_vm9, %v1982_v17, %v1136_v30  ;;  %v1148_v35 = vmul.f32 %v1984_v31, %v1131_v22  ;;  %vm1153_vm13 = vweird.f32 %v1984_v31  ;;  %v1229_v2 = vpop.permute.xlu2 %1228 }
 0xb38   :  { %v1145_v36 = vsel %vm1142_vm10, %v1144_v33, %v1140_v34  ;;  %vm1154_vm15 = vmor %vm1152_vm14, %vm1153_vm13 }
 0xb39   :  { %v1149_v44 = vsub.f32 1.0, %v1148_v35  ;;  %v1146_v46 = vmul.f32 %v1978_v49, %v1145_v36 }
 0xb3b   :  { %v1150_v45 = vmul.f32 %v1984_v31, %v1149_v44  ;;  %1833 = vmatmul.msk.f32.vlgmr.msra.gmra.mxu2 %vm253_vm12, %v1146_v46 }
 0xb3d   :  { %v1151_v48 = vadd.f32 %v1984_v31, %v1150_v45 }
 0xb3f   :  { %v1155_v40 = vsel %vm1154_vm15, %v1984_v31, %v1151_v48 }
 0xb40   :  { %v1160_v53 = vsel %vm1157_vm1, %v1159_v52, %v1155_v40 }
 0xb41   :  { %v1161_v56 = vmul.f32 %v1980_v14, %v1160_v53 }
 0xb43   :  { %1834 = vmatmul.msk.f32.gmra.mxu2 %vm253_vm12, %v1161_v56 }
 0xb44   :  { %v1021_v24 = vpop.f32.mrf.mxu0 }
 0xb45   :  { %v1022_v58 = vadd.f32 %v2524_v63, %v1021_v24 }
 0xb47   :  { %v1233_v59 = vpop.permute.xlu1 %1232  ;;  %v1027_v60 = vsel %vm253_vm12, %v1022_v58, -inf }
 0xb48   :  { %1838 = vmatpush.xpose.msk.msra.mxu0 %vm221_vm11, %v1233_v59  ;;  %1028 = vmax.xlane.f32.xlu0 %v1027_v60 }
 0xb4b   :  { %1839 = vmatmul.msk.f32.vlgmr.msra.gmra.mxu0 %vm221_vm11, %v1229_v2  ;;  %1845 = vmatmul.msk.f32.vlgmr.msrb.gmra.mxu2 %vm221_vm11, %v1353_v1 }
 0xb4c   :  { %v1024_v4 = vpop.f32.mrf.mxu0 }
 0xb4d   :  { %v1025_v5 = vadd.f32 %v2531_v55, %v1024_v4 }
 0xb4f   :  { %v1030_v7 = vsel %vm253_vm12, %v1025_v5, -inf  ;;  %v1231_v10 = vpop.permute.xlu1 %1230 }
 0xb50   :  { %1031 = vmax.xlane.f32.xlu2 %v1030_v7 }
 0xb53   :  { %1840 = vmatmul.msk.f32.gmra.mxu0 %vm221_vm11, %v1231_v10  ;;  %1846 = vmatmul.msk.f32.gmra.mxu2 %vm221_vm11, %v1355_v9 }
 0xbbb   :  { %v1029_v51 = vpop.xlane.xlu0 %1028 }
 0xbbc   :  { %v1033_v41 = vsub.f32 %v1022_v58, %v1029_v51 }
 0xbbe   :  { %v2573_v11 = vpop.f32.mrf.mxu2  ;;  %v1035_v49 = vmul.f32 1.442695, %v1033_v41 }
 0xbc0   :  { %1985 = vpow2.f32 %v1035_v49 }
 0xbc3   :  { %v1032_v54 = vpop.xlane.xlu2 %1031 }
 0xbc4   :  { %v1034_v57 = vsub.f32 %v1025_v5, %v1032_v54 }
 0xbc6   :  { %v2575_v12 = vpop.f32.mrf.mxu2  ;;  %v1986_v18 = vpop.eup %1985  ;;  %v1037_v17 = vmul.f32 1.442695, %v1034_v57 }
 0xbc7   :  { %v1039_v21 = vsel %vm253_vm12, %v1986_v18, 0.0 }
 0xbc8   :  { %v1261_v13 = vpop.f32.mrf.mxu0  ;;  %1987 = vpow2.f32 %v1037_v17 }
 0xbc9   :  { %v1262_v14 = vadd.f32 %v2524_v63, %v1261_v13 }
 0xbcb   :  { %v1267_v15 = vsel %vm253_vm12, %v1262_v14, -inf }
 0xbcc   :  { %1268 = vmax.xlane.f32.xlu0 %v1267_v15 }
 0xbce   :  { %v1385_v32 = vpop.f32.mrf.mxu2  ;;  %v2586_v26 = vpop.eup %1987 }
 0xbcf   :  { %v1386_v16 = vadd.f32 %v2524_v63, %v1385_v32  ;;  %v1042_v27 = vsel %vm253_vm12, %v2586_v26, 0.0 }
 0xbd0   :  { %v1264_v20 = vpop.f32.mrf.mxu0 }
 0xbd1   :  { %v1391_v19 = vsel %vm253_vm12, %v1386_v16, -inf  ;;  %v1265_v61 = vadd.f32 %v2531_v55, %v1264_v20 }
 0xbd2   :  { %1392 = vmax.xlane.f32.xlu1 %v1391_v19 }
 0xbd3   :  { %v1270_v63 = vsel %vm253_vm12, %v1265_v61, -inf }
 0xbd4   :  { %1040 = vadd.xlane.f32.xlu0 %v1039_v21 }
 0xbd6   :  { %v1388_v23 = vpop.f32.mrf.mxu2 }
 0xbd7   :  { %v1389_v22 = vadd.f32 %v2531_v55, %v1388_v23 }
 0xbd9   :  { %v1394_v25 = vsel %vm253_vm12, %v1389_v22, -inf }
 0xbda   :  { %1395 = vmax.xlane.f32.xlu2 %v1394_v25  ;;  %1271 = vmax.xlane.f32.xlu1 %v1270_v63 }
 0xbe2   :  { %1043 = vadd.xlane.f32.xlu2 %v1042_v27 }
 0xc3f   :  { %v1269_v29 = vpop.xlane.xlu0 %1268 }
 0xc40   :  { %v1273_v30 = vsub.f32 %v1262_v14, %v1269_v29 }
 0xc42   :  { %v1275_v31 = vmul.f32 1.442695, %v1273_v30 }
 0xc44   :  { %1989 = vpow2.f32 %v1275_v31 }
 0xc45   :  { %v1393_v33 = vpop.xlane.xlu1 %1392 }
 0xc46   :  { %v1397_v34 = vsub.f32 %v1386_v16, %v1393_v33 }
 0xc47   :  { %v1041_v55 = vpop.xlane.xlu0 %1040 }
 0xc48   :  { %v1399_v35 = vmul.f32 1.442695, %v1397_v34  ;;  %1991 = vrcp.f32 %v1041_v55  ;;  %v1056_v59 = vand.u32 2147483648, %v1041_v55  ;;  %v1054_v1 = vand.u32 2147483647, %v1041_v55 }
 0xc49   :  { %vm1050_vm2 = vweird.f32 %v1041_v55 }
 0xc4a   :  { %v2590_v36 = vpop.eup %1989  ;;  %1993 = vpow2.f32 %v1399_v35  ;;  %v1057_v5 = vor.u32 1.1754944e-38, %v1056_v59  ;;  %vm1055_vm5 = vcmp.eq.f32.partialorder %v1054_v1, 8.507059e+37 }
 0xc4b   :  { %v1279_v44 = vsel %vm253_vm12, %v2590_v36, 0.0 }
 0xc4c   :  { %1280 = vadd.xlane.f32.xlu0 %v1279_v44 }
 0xc4d   :  { %v1396_v46 = vpop.xlane.xlu2 %1395  ;;  %v1272_v42 = vpop.xlane.xlu1 %1271 }
 0xc4e   :  { %v1992_v45 = vpop.eup %1991  ;;  %v1398_v47 = vsub.f32 %v1389_v22, %v1396_v46  ;;  %v1274_v48 = vsub.f32 %v1265_v61, %v1272_v42 }
 0xc4f   :  { %v1046_v52 = vmul.f32 %v1992_v45, %v1041_v55  ;;  %vm1051_vm11 = vweird.f32 %v1992_v45 }
 0xc50   :  { %v2594_v40 = vpop.eup %1993  ;;  %v1401_v53 = vmul.f32 1.442695, %v1398_v47  ;;  %v1277_v56 = vmul.f32 1.442695, %v1274_v48  ;;  %vm1052_vm4 = vmor %vm1050_vm2, %vm1051_vm11 }
 0xc51   :  { %v1047_v24 = vsub.f32 1.0, %v1046_v52  ;;  %v1403_v58 = vsel %vm253_vm12, %v2594_v40, 0.0 }
 0xc52   :  { %1995 = vpow2.f32 %v1401_v53  ;;  %1404 = vadd.xlane.f32.xlu1 %v1403_v58 }
 0xc53   :  { %v1048_v60 = vmul.f32 %v1992_v45, %v1047_v24  ;;  %1997 = vpow2.f32 %v1277_v56 }
 0xc55   :  { %v1049_v2 = vadd.f32 %v1992_v45, %v1048_v60  ;;  %v1044_v4 = vpop.xlane.xlu2 %1043 }
 0xc56   :  { %1999 = vrcp.f32 %v1044_v4  ;;  %v1071_v32 = vand.u32 2147483648, %v1044_v4  ;;  %v1069_v57 = vand.u32 2147483647, %v1044_v4  ;;  %vm1065_vm7 = vweird.f32 %v1044_v4 }
 0xc57   :  { %v1053_v7 = vsel %vm1052_vm4, %v1992_v45, %v1049_v2 }
 0xc58   :  { %v2598_v9 = vpop.eup %1995  ;;  %v1058_v10 = vsel %vm1055_vm5, %v1057_v5, %v1053_v7  ;;  %vm1070_vm9 = vcmp.eq.f32.partialorder %v1069_v57, 8.507059e+37 }
 0xc59   :  { %v2600_v51 = vpop.eup %1997  ;;  %v1406_v41 = vsel %vm253_vm12, %v2598_v9, 0.0  ;;  %v1059_v49 = vmul.f32 %v1986_v18, %v1058_v10  ;;  %v1072_v18 = vor.u32 1.1754944e-38, %v1071_v32 }
 0xc5a   :  { %1407 = vadd.xlane.f32.xlu2 %v1406_v41  ;;  %v1282_v13 = vsel %vm253_vm12, %v2600_v51, 0.0 }
 0xc5b   :  { %1283 = vadd.xlane.f32.xlu1 %v1282_v13  ;;  %1835 = vmatmul.msk.f32.vlgmr.msra.gmra.mxu3 %vm253_vm12, %v1059_v49 }
 0xc5c   :  { %v2000_v14 = vpop.eup %1999 }
 0xc5d   :  { %v1061_v15 = vmul.f32 %v2000_v14, %v1044_v4  ;;  %vm1066_vm6 = vweird.f32 %v2000_v14 }
 0xc5e   :  { %vm1067_vm8 = vmor %vm1065_vm7, %vm1066_vm6 }
 0xc5f   :  { %v1062_v54 = vsub.f32 1.0, %v1061_v15 }
 0xc60   :  { %1908 = vrot.lane.b32.xlu0 %v2536_v8, %s2063_s12  ;;  %s2065_s12 = smov [#allocation2]  }
 0xc61   :  { %v1063_v16 = vmul.f32 %v2000_v14, %v1062_v54 }
 0xc63   :  { %v1064_v19 = vadd.f32 %v2000_v14, %v1063_v16 }
 0xc65   :  { %v1068_v20 = vsel %vm1067_vm8, %v2000_v14, %v1064_v19 }
 0xc66   :  { %v1073_v21 = vsel %vm1070_vm9, %v1072_v18, %v1068_v20 }
 0xc67   :  { %v1074_v17 = vmul.f32 %v2586_v26, %v1073_v21 }
 0xc69   :  { %1836 = vmatmul.msk.f32.gmra.mxu3 %vm253_vm12, %v1074_v17 }
 0xc72   :  { %1913 = vrot.lane.b32.xlu2 %v2536_v8, %s2064_s13 }
 0xc7a   :  { %1918 = vrot.lane.b32.xlu2 %v1917_v38, %s2064_s13 }
 0xcbf   :  { %v1281_v61 = vpop.xlane.xlu0 %1280 }
 0xcc0   :  { %2001 = vrcp.f32 %v1281_v61  ;;  %v1294_v0 = vand.u32 2147483647, %v1281_v61  ;;  %v1296_v38 = vand.u32 2147483648, %v1281_v61  ;;  %vm1290_vm13 = vweird.f32 %v1281_v61 }
 0xcc2   :  { %vm1295_vm11 = vcmp.eq.f32.partialorder %v1294_v0, 8.507059e+37  ;;  %v1297_v48 = vor.u32 1.1754944e-38, %v1296_v38 }
 0xcc5   :  { %v1405_v23 = vpop.xlane.xlu1 %1404 }
 0xcc6   :  { %v2002_v22 = vpop.eup %2001  ;;  %2003 = vrcp.f32 %v1405_v23  ;;  %v1420_v33 = vand.u32 2147483648, %v1405_v23  ;;  %v1418_v55 = vand.u32 2147483647, %v1405_v23  ;;  %vm1414_vm1 = vweird.f32 %v1405_v23 }
 0xcc7   :  { %v1286_v25 = vmul.f32 %v2002_v22, %v1281_v61  ;;  %vm1291_vm10 = vweird.f32 %v2002_v22 }
 0xcc8   :  { %vm2623_vm15 = vmor %vm1290_vm13, %vm1291_vm10  ;;  %v1421_v52 = vor.u32 1.1754944e-38, %v1420_v33  ;;  %vm1419_vm4 = vcmp.eq.f32.partialorder %v1418_v55, 8.507059e+37 }
 0xcc9   :  { %v1287_v63 = vsub.f32 1.0, %v1286_v25 }
 0xccb   :  { %v1288_v27 = vmul.f32 %v2002_v22, %v1287_v63 }
 0xccc   :  { %v2004_v29 = vpop.eup %2003 }
 0xccd   :  { %v1410_v26 = vmul.f32 %v2004_v29, %v1405_v23  ;;  %v2617_v30 = vpop.xlane.xlu2 %1407  ;;  %v1289_v31 = vadd.f32 %v2002_v22, %v1288_v27  ;;  %vm1415_vm14 = vweird.f32 %v2004_v29 }
 0xcce   :  { %2005 = vrcp.f32 %v2617_v30  ;;  %v2620_v8 = vpop.xlane.xlu1 %1283  ;;  %vm1416_vm2 = vmor %vm1414_vm1, %vm1415_vm14  ;;  %v1435_v10 = vand.u32 2147483648, %v2617_v30  ;;  %v1433_v13 = vand.u32 2147483647, %v2617_v30  ;;  %vm1429_vm7 = vweird.f32 %v2617_v30 }
 0xccf   :  { %v1411_v62 = vsub.f32 1.0, %v1410_v26  ;;  %2007 = vrcp.f32 %v2620_v8  ;;  %v1293_v46 = vsel %vm2623_vm15, %v2002_v22, %v1289_v31  ;;  %v1311_v15 = vand.u32 2147483648, %v2620_v8 }
 0xcd0   :  { %v1298_v60 = vsel %vm1295_vm11, %v1297_v48, %v1293_v46  ;;  %v1436_v57 = vor.u32 1.1754944e-38, %v1435_v10  ;;  %vm1305_vm8 = vweird.f32 %v2620_v8  ;;  %vm1434_vm10 = vcmp.eq.f32.partialorder %v1433_v13, 8.507059e+37 }
 0xcd1   :  { %v1412_v34 = vmul.f32 %v2004_v29, %v1411_v62  ;;  %v1299_v54 = vmul.f32 %v2590_v36, %v1298_v60  ;;  %v1312_v18 = vor.u32 1.1754944e-38, %v1311_v15  ;;  %v1476_v26 = vperm.slane %v2504_v37, 1 }
 0xcd2   :  { %v1909_v44 = vpop.permute.xlu0 %1908 }
 0xcd3   :  { %v1413_v42 = vadd.f32 %v2004_v29, %v1412_v34  ;;  %v1910_v45 = vunpack.i.l.bf16 %v1909_v44  ;;  %v1911_v58 = vunpack.i.h.bf16 %v1909_v44 }
 0xcd4   :  { %v2006_v47 = vpop.eup %2005 }
 0xcd5   :  { %v2008_v53 = vpop.eup %2007  ;;  %v1417_v56 = vsel %vm1416_vm2, %v2004_v29, %v1413_v42  ;;  %v1425_v24 = vmul.f32 %v2006_v47, %v2617_v30  ;;  %v1914_v59 = vpop.permute.xlu2 %1913  ;;  %1465 = vmatpush.msrb.mxu3 %v1910_v45  ;;  %vm1430_vm5 = vweird.f32 %v2006_v47 }
 0xcd6   :  { %v1422_v1 = vsel %vm1419_vm4, %v1421_v52, %v1417_v56  ;;  %v1301_v2 = vmul.f32 %v2008_v53, %v2620_v8  ;;  %v1915_v4 = vunpack.i.l.bf16 %v1914_v59  ;;  %v1916_v49 = vunpack.i.h.bf16 %v1914_v59  ;;  %vm1431_vm9 = vmor %vm1429_vm7, %vm1430_vm5 }
 0xcd7   :  { %v1426_v5 = vsub.f32 1.0, %v1425_v24  ;;  %1466 = vmatpush.msrb.mxu3 %v1911_v58  ;;  %v1423_v7 = vmul.f32 %v2594_v40, %v1422_v1  ;;  %vm1306_vm6 = vweird.f32 %v2008_v53  ;;  %v1309_v40 = vand.u32 2147483647, %v2620_v8 }
 0xcd8   :  { %v1302_v41 = vsub.f32 1.0, %v1301_v2  ;;  %1341 = vmatpush.msrb.mxu1 %v1915_v4  ;;  %vm1307_vm13 = vmor %vm1305_vm8, %vm1306_vm6 }
 0xcd9   :  { %v1427_v14 = vmul.f32 %v2006_v47, %v1426_v5  ;;  %1847 = vmatmul.msk.f32.vlgmr.msrb.gmra.mxu3 %vm253_vm12, %v1423_v7  ;;  %vm1310_vm14 = vcmp.eq.f32.partialorder %v1309_v40, 8.507059e+37 }
 0xcda   :  { %v1303_v32 = vmul.f32 %v2008_v53, %v1302_v41  ;;  %1342 = vmatpush.msrb.mxu1 %v1916_v49 }
 0xcdb   :  { %1841 = vmatmul.msk.f32.vlgmr.msrb.gmra.mxu1 %vm253_vm12, %v1299_v54  ;;  %v1428_v16 = vadd.f32 %v2006_v47, %v1427_v14 }
 0xcdc   :  { %v1304_v19 = vadd.f32 %v2008_v53, %v1303_v32 }
 0xcdd   :  { %v1432_v20 = vsel %vm1431_vm9, %v2006_v47, %v1428_v16  ;;  %v1919_v45 = vpop.permute.xlu2 %1918 }
 0xcde   :  { %v1437_v36 = vsel %vm1434_vm10, %v1436_v57, %v1432_v20  ;;  %v1308_v21 = vsel %vm1307_vm13, %v2008_v53, %v1304_v19  ;;  %v1222_v22 = vpop.f32.mrf.mxu3  ;;  %v1920_v47 = vunpack.i.l.bf16 %v1919_v45  ;;  %v1921_v52 = vunpack.i.h.bf16 %v1919_v45 }
 0xcdf   :  { %v1438_v17 = vmul.f32 %v2598_v9, %v1437_v36  ;;  %v1313_v61 = vsel %vm1310_vm14, %v1312_v18, %v1308_v21  ;;  %v1223_v27 = vadd.f32 %v1222_v22, %v2573_v11  ;;  %v1531_v18 = vperm.slane %v2504_v37, 2 }
 0xce0   :  { %v1314_v23 = vmul.f32 %v2600_v51, %v1313_v61  ;;  %1572 = vmatpush.msrb.mxu0 %v1920_v47  ;;  %v1534_v61 = vperm.slane %v2504_v37, 3  ;;  %vm1701_vm10 = vcmask 1040384  }
 0xce1   :  { %1848 = vmatmul.msk.f32.gmra.mxu3 %vm253_vm12, %v1438_v17 }
 0xce2   :  { %1573 = vmatpush.msrb.mxu0 %v1921_v52 }
 0xce3   :  { %1842 = vmatmul.msk.f32.gmra.mxu1 %vm253_vm12, %v1314_v23 }
 0xcec   :  { %v1225_v25 = vpop.f32.mrf.mxu3 }
 0xced   :  { %v1226_v9 = vadd.f32 %v1225_v25, %v2575_v12 }
 0xd58   :  { %v1344_v63 = vpop.f32.mrf.mxu1 }
 0xd59   :  { %v1350_v29 = vadd.f32 %v1344_v63, %v1223_v27 }
 0xd5c   :  { %v1468_v30 = vpop.f32.mrf.mxu3 }
 0xd5d   :  { %v1474_v8 = vadd.f32 %v1468_v30, %v1350_v29 }
 0xd5f   :  { %v1477_v31 = vadd.f32 %v1476_v26, %v1474_v8  ;;  %v1858_v8 = vld [vmem:[%s2752_s4 + $0x78] sm:$0xff] }
 0xd60   :  { %v1347_v62 = vpop.f32.mrf.mxu1  ;;  %1625 = vmatpush.msra.mxu1 %v1858_v8 }
 0xd61   :  { %v1479_v0 = vadd.f32 %v1477_v31, %v2488_v28  ;;  %v1351_v38 = vadd.f32 %v1347_v62, %v1226_v9  ;;  %v1857_v31 = vld [vmem:[%s2752_s4 + $0x70] sm:$0xff]  ;;  %v1856_v62 = vld [vmem:[%s2752_s4 + $0x68] sm:$0xff]  ;;  %v1855_v9 = vld [vmem:[%s2752_s4 + $0x60] sm:$0xff] }
 0xd62   :  { %1626 = vmatpush.msra.mxu1 %v1857_v31 }
 0xd63   :  { %v1481_v51 = vsel %vm85_vm3, %v1479_v0, 0.0  ;;  %v1489_v35 = vmul.f32 %v1479_v0, %v1479_v0 }
 0xd64   :  { %v1471_v33 = vpop.f32.mrf.mxu3  ;;  %1482 = vadd.xlane.f32.xlu1 %v1481_v51  ;;  %1627 = vmatpush.msra.mxu1 %v1856_v62  ;;  %v1852_v51 = vld [vmem:[%s2752_s4 + $0x48] sm:$0xff] }
 0xd65   :  { %v1475_v34 = vadd.f32 %v1471_v33, %v1351_v38  ;;  %v1491_v46 = vsel %vm85_vm3, %v1489_v35, 0.0  ;;  %v1853_v38 = vld [vmem:[%s2752_s4 + $0x50] sm:$0xff]  ;;  %v1851_v33 = vld [vmem:[%s2752_s4 + $0x40] sm:$0xff] }
 0xd66   :  { %1628 = vmatpush.msra.mxu1 %v1855_v9 }
 0xd67   :  { %v1478_v55 = vadd.f32 %v1476_v26, %v1475_v34  ;;  %v1537_v34 = vperm.slane %v2504_v37, 4 }
 0xd69   :  { %v2651_v11 = vadd.f32 %v1478_v55, %v2495_v50 }
 0xd6b   :  { %v1484_v44 = vsel %vm85_vm3, %v2651_v11, 0.0  ;;  %v1490_v28 = vmul.f32 %v2651_v11, %v2651_v11 }
 0xd6c   :  { %1485 = vadd.xlane.f32.xlu0 %v1484_v44  ;;  %1492 = vadd.xlane.f32.xlu1 %v1491_v46 }
 0xd6d   :  { %v1494_v12 = vsel %vm85_vm3, %v1490_v28, 0.0 }
 0xd74   :  { %1495 = vadd.xlane.f32.xlu1 %v1494_v12 }
 0xd8d   :  { %1923 = vrot.lane.b32.xlu1 %v1922_v43, %s2064_s13  ;;  %s1767_s13 = sshll.u32 %s2065_s12, 4  ;;  %s1768_s13 = int_to_ptr.vmem [resolvable:$true] %s1767_s13 }
 0xdd7   :  { %v1483_v50 = vpop.xlane.xlu1 %1482 }
 0xdd8   :  { %v1487_v42 = vmul.f32 %v1483_v50, %v2171_v39 }
 0xdda   :  { %v1499_v53 = vmul.f32 %v1487_v42, %v1487_v42  ;;  %v1505_v32 = vsub.f32 %v1479_v0, %v1487_v42  ;;  %v1854_v0 = vld [vmem:[%s2752_s4 + $0x58] sm:$0xff] }
 0xddb   :  { %1629 = vmatpush.msra.mxu1 %v1854_v0 }
 0xddd   :  { %1630 = vmatpush.msra.mxu1 %v1853_v38 }
 0xddf   :  { %v1493_v48 = vpop.xlane.xlu1 %1492  ;;  %v1486_v24 = vpop.xlane.xlu0 %1485  ;;  %1631 = vmatpush.msra.mxu1 %v1852_v51 }
 0xde0   :  { %v1497_v56 = vmul.f32 %v1493_v48, %v2171_v39  ;;  %v1488_v59 = vmul.f32 %v1486_v24, %v2171_v39 }
 0xde1   :  { %1632 = vmatpush.msra.mxu1 %v1851_v33 }
 0xde2   :  { %v1501_v58 = vsub.f32 %v1497_v56, %v1499_v53  ;;  %v1500_v6 = vmul.f32 %v1488_v59, %v1488_v59  ;;  %v1506_v22 = vsub.f32 %v2651_v11, %v1488_v59 }
 0xde4   :  { %v1503_v60 = vmax.f32 %v1501_v58, 0.0 }
 0xde6   :  { %v1507_v1 = vadd.f32 1e-12, %v1503_v60 }
 0xde7   :  { %v1496_v3 = vpop.xlane.xlu1 %1495 }
 0xde8   :  { %2009 = vrsqrt.f32 %v1507_v1  ;;  %v1498_v43 = vmul.f32 %v1496_v3, %v2171_v39  ;;  %vm1515_vm15 = vweird.f32 %v1507_v1 }
 0xdea   :  { %v1502_v2 = vsub.f32 %v1498_v43, %v1500_v6  ;;  %v1610_v43 = vperm.slane %v2504_v37, 5 }
 0xdec   :  { %v1504_v4 = vmax.f32 %v1502_v2, 0.0 }
 0xdee   :  { %v2010_v5 = vpop.eup %2009  ;;  %v1508_v7 = vadd.f32 1e-12, %v1504_v4 }
 0xdef   :  { %v1510_v10 = vmul.f32 %v2010_v5, %v1507_v1  ;;  %vm1516_vm12 = vweird.f32 %v2010_v5 }
 0xdf0   :  { %2011 = vrsqrt.f32 %v1508_v7  ;;  %vm1517_vm1 = vmor %vm1515_vm15, %vm1516_vm12  ;;  %vm1525_vm2 = vweird.f32 %v1508_v7 }
 0xdf1   :  { %v1511_v41 = vmul.f32 %v2010_v5, %v1510_v10 }
 0xdf3   :  { %v1512_v49 = vmul.f32 0.5, %v1511_v41 }
 0xdf5   :  { %v1513_v13 = vsub.f32 1.5, %v1512_v49 }
 0xdf6   :  { %v2012_v14 = vpop.eup %2011 }
 0xdf7   :  { %v1514_v15 = vmul.f32 %v2010_v5, %v1513_v13  ;;  %v1520_v54 = vmul.f32 %v2012_v14, %v1508_v7  ;;  %vm1526_vm11 = vweird.f32 %v2012_v14 }
 0xdf8   :  { %vm1527_vm4 = vmor %vm1525_vm2, %vm1526_vm11 }
 0xdf9   :  { %v1518_v40 = vsel %vm1517_vm1, %v2010_v5, %v1514_v15  ;;  %v1521_v16 = vmul.f32 %v2012_v14, %v1520_v54 }
 0xdfa   :  { %v1529_v57 = vmul.f32 %v1518_v40, %v1505_v32 }
 0xdfb   :  { %v1522_v19 = vmul.f32 0.5, %v1521_v16 }
 0xdfc   :  { %v1532_v17 = vmul.f32 %v1531_v18, %v1529_v57 }
 0xdfd   :  { %v1523_v20 = vsub.f32 1.5, %v1522_v19 }
 0xdfe   :  { %v1535_v27 = vadd.f32 %v1534_v61, %v1532_v17  ;;  %v1708_v17 = vld [vmem:[%s2754_s6 + $0x28] sm:$0xff] }
 0xdff   :  { %v1524_v36 = vmul.f32 %v2012_v14, %v1523_v20  ;;  %v1924_v21 = vpop.permute.xlu1 %1923 }
 0xe00   :  { %v1925_v23 = vunpack.i.l.bf16 %v1924_v21  ;;  %v1926_v63 = vunpack.i.h.bf16 %v1924_v21  ;;  %v1710_v21 = vld [vmem:[%s2754_s6 + $0x38] sm:$0xff] }
 0xe01   :  { %v1528_v25 = vsel %vm1527_vm4, %v2012_v14, %v1524_v36  ;;  %1727 = vmatpush.msra.mxu2 %v1710_v21 }
 0xe02   :  { %1574 = vmatpush.msrb.mxu0 %v1925_v23  ;;  %v1530_v29 = vmul.f32 %v1528_v25, %v1506_v22  ;;  %v1706_v22 = vld [vmem:[%s2754_s6 + $0x18] sm:$0xff] }
 0xe03   :  { %1728 = vmatpush.msra.mxu2 %v1708_v17 }
 0xe04   :  { %1575 = vmatpush.msrb.mxu0 %v1926_v63  ;;  %v1533_v26 = vmul.f32 %v1531_v18, %v1530_v29  ;;  %v1704_v63 = vld [vmem:[%s2754_s6 + $0x8] sm:$0xff] }
 0xe05   :  { %1849 = vmatmul.msk.f32.vlgmr.msrb.gmra.mxu0 %vm85_vm3, %v1535_v27  ;;  %1729 = vmatpush.msra.mxu2 %v1706_v22 }
 0xe06   :  { %v1536_v30 = vadd.f32 %v1534_v61, %v1533_v26 }
 0xe07   :  { %1730 = vmatpush.msra.mxu2 %v1704_v63 }
 0xe0d   :  { %1850 = vmatmul.msk.f32.gmra.mxu0 %vm85_vm3, %v1536_v30 }
 0xe82   :  { %v1577_v55 = vpop.f32.mrf.mxu0 }
 0xe83   :  { %v1578_v35 = vadd.f32 %v1577_v55, %v1537_v34 }
 0xe85   :  { %v1583_v11 = vmul.f32 %v1578_v35, %v1578_v35 }
 0xe87   :  { %v1585_v44 = vmul.f32 %v1583_v11, %v1578_v35 }
 0xe89   :  { %v1587_v46 = vmul.f32 0.044715, %v1585_v44 }
 0xe8a   :  { %v1580_v28 = vpop.f32.mrf.mxu0 }
 0xe8b   :  { %v1589_v12 = vadd.f32 %v1587_v46, %v1578_v35  ;;  %v1581_v50 = vadd.f32 %v1580_v28, %v1537_v34  ;;  %v1692_v46 = vperm.slane %v2504_v37, 6 }
 0xe8d   :  { %v1591_v42 = vmul.f32 0.7978846, %v1589_v12  ;;  %v1584_v45 = vmul.f32 %v1581_v50, %v1581_v50 }
 0xe8f   :  { %2013 = vtanh.f32 %v1591_v42  ;;  %v1586_v47 = vmul.f32 %v1584_v45, %v1581_v50  ;;  %v1695_v42 = vperm.slane %v2504_v37, 7  ;;  %v1707_v37 = vld [vmem:[%s2754_s6 + $0x20] sm:$0xff] }
 0xe91   :  { %v1588_v48 = vmul.f32 0.044715, %v1586_v47 }
 0xe93   :  { %v1590_v52 = vadd.f32 %v1588_v48, %v1581_v50 }
 0xe95   :  { %v2014_v53 = vpop.eup %2013  ;;  %v1592_v56 = vmul.f32 0.7978846, %v1590_v52 }
 0xe96   :  { %v1595_v24 = vadd.f32 1.0, %v2014_v53 }
 0xe97   :  { %2015 = vtanh.f32 %v1592_v56 }
 0xe98   :  { %v1597_v58 = vmul.f32 0.5, %v1595_v24 }
 0xe9a   :  { %v1599_v59 = vmul.f32 %v1597_v58, %v1578_v35 }
 0xe9c   :  { %1859 = vmatmul.msk.f32.vlgmr.msra.gmra.mxu1 %vm55_vm0, %v1599_v59 }
 0xe9d   :  { %v2016_v60 = vpop.eup %2015 }
 0xe9e   :  { %v1596_v1 = vadd.f32 1.0, %v2016_v60  ;;  %v1709_v60 = vld [vmem:[%s2754_s6 + $0x30] sm:$0xff] }
 0xe9f   :  { %1752 = vmatpush.msra.mxu3 %v1709_v60 }
 0xea0   :  { %v1598_v3 = vmul.f32 0.5, %v1596_v1  ;;  %v1705_v1 = vld [vmem:[%s2754_s6 + $0x10] sm:$0xff] }
 0xea1   :  { %1753 = vmatpush.msra.mxu3 %v1707_v37 }
 0xea2   :  { %v1600_v6 = vmul.f32 %v1598_v3, %v1581_v50  ;;  %v1703_v3 = vld [vmem:[%s2754_s6] sm:$0xff]  ;;  %s1769_s6 = sshll.u32 %s2756_s8, 4  ;;  %s1770_s6 = int_to_ptr.hbm [resolvable:$true] %s1769_s6 }
 0xea3   :  { %1754 = vmatpush.msra.mxu3 %v1705_v1 }
 0xea4   :  { %1860 = vmatmul.msk.f32.gmra.mxu1 %vm55_vm0, %v1600_v6  ;;  %v2026_v6 = vld [vmem:[%s2755_s7] sm:$0xf] }
 0xea5   :  { %1755 = vmatpush.msra.mxu3 %v1703_v3 }
 0xf19   :  { %v1634_v2 = vpop.f32.mrf.mxu1 }
 0xf1a   :  { %v1635_v4 = vadd.f32 %v1634_v2, %v1610_v43 }
 0xf1c   :  { %v2700_v5 = vadd.f32 %v1635_v4, %v1535_v27 }
 0xf1e   :  { %v1642_v7 = vsel %vm85_vm3, %v2700_v5, 0.0  ;;  %v1650_v54 = vmul.f32 %v2700_v5, %v2700_v5 }
 0xf1f   :  { %1643 = vadd.xlane.f32.xlu1 %v1642_v7  ;;  %v1736_v7 = vperm.slane %v2026_v6, 3 }
 0xf20   :  { %v1652_v32 = vsel %vm85_vm3, %v1650_v54, 0.0 }
 0xf21   :  { %v1637_v10 = vpop.f32.mrf.mxu1 }
 0xf22   :  { %v1638_v41 = vadd.f32 %v1637_v10, %v1610_v43  ;;  %v1711_v43 = vperm.slane %v2026_v6, 2 }
 0xf24   :  { %v1641_v49 = vadd.f32 %v1638_v41, %v1536_v30 }
 0xf26   :  { %v1645_v13 = vsel %vm85_vm3, %v1641_v49, 0.0  ;;  %v1651_v14 = vmul.f32 %v1641_v49, %v1641_v49 }
 0xf27   :  { %1646 = vadd.xlane.f32.xlu2 %v1645_v13 }
 0xf28   :  { %v1655_v15 = vsel %vm85_vm3, %v1651_v14, 0.0 }
 0xf29   :  { %1656 = vadd.xlane.f32.xlu0 %v1655_v15 }
 0xf31   :  { %1653 = vadd.xlane.f32.xlu0 %v1652_v32 }
 0xf92   :  { %v1644_v20 = vpop.xlane.xlu1 %1643 }
 0xf93   :  { %v1648_v61 = vmul.f32 %v1644_v20, %v2171_v39 }
 0xf95   :  { %v1660_v29 = vmul.f32 %v1648_v61, %v1648_v61  ;;  %v1666_v47 = vsub.f32 %v2700_v5, %v1648_v61 }
 0xf9a   :  { %v1647_v40 = vpop.xlane.xlu2 %1646 }
 0xf9b   :  { %v1649_v16 = vmul.f32 %v1647_v40, %v2171_v39 }
 0xf9c   :  { %v1657_v57 = vpop.xlane.xlu0 %1656 }
 0xf9d   :  { %v1661_v19 = vmul.f32 %v1649_v16, %v1649_v16  ;;  %v1659_v18 = vmul.f32 %v1657_v57, %v2171_v39  ;;  %v1667_v35 = vsub.f32 %v1641_v49, %v1649_v16 }
 0xf9f   :  { %v1663_v36 = vsub.f32 %v1659_v18, %v1661_v19 }
 0xfa1   :  { %v1665_v23 = vmax.f32 %v1663_v36, 0.0 }
 0xfa3   :  { %v1669_v25 = vadd.f32 1e-12, %v1665_v23 }
 0xfa4   :  { %v1654_v27 = vpop.xlane.xlu0 %1653 }
 0xfa5   :  { %2017 = vrsqrt.f32 %v1669_v25  ;;  %v1658_v26 = vmul.f32 %v1654_v27, %v2171_v39  ;;  %vm1686_vm5 = vweird.f32 %v1669_v25 }
 0xfa7   :  { %v1662_v30 = vsub.f32 %v1658_v26, %v1660_v29 }
 0xfa9   :  { %v1664_v8 = vmax.f32 %v1662_v30, 0.0 }
 0xfab   :  { %v2018_v31 = vpop.eup %2017  ;;  %v1668_v62 = vadd.f32 1e-12, %v1664_v8 }
 0xfac   :  { %v1681_v9 = vmul.f32 %v2018_v31, %v1669_v25  ;;  %vm1687_vm0 = vweird.f32 %v2018_v31 }
 0xfad   :  { %2019 = vrsqrt.f32 %v1668_v62  ;;  %vm1688_vm6 = vmor %vm1686_vm5, %vm1687_vm0  ;;  %vm1676_vm8 = vweird.f32 %v1668_v62 }
 0xfae   :  { %v1682_v0 = vmul.f32 %v2018_v31, %v1681_v9 }
 0xfb0   :  { %v1683_v38 = vmul.f32 0.5, %v1682_v0 }
 0xfb2   :  { %v1684_v51 = vsub.f32 1.5, %v1683_v38 }
 0xfb3   :  { %v2020_v33 = vpop.eup %2019 }
 0xfb4   :  { %v1685_v34 = vmul.f32 %v2018_v31, %v1684_v51  ;;  %v1671_v55 = vmul.f32 %v2020_v33, %v1668_v62  ;;  %vm1677_vm7 = vweird.f32 %v2020_v33 }
 0xfb5   :  { %vm1678_vm9 = vmor %vm1676_vm8, %vm1677_vm7 }
 0xfb6   :  { %v1689_v11 = vsel %vm1688_vm6, %v2018_v31, %v1685_v34  ;;  %v1672_v44 = vmul.f32 %v2020_v33, %v1671_v55 }
 0xfb7   :  { %v1691_v39 = vmul.f32 %v1689_v11, %v1667_v35 }
 0xfb8   :  { %v1673_v28 = vmul.f32 0.5, %v1672_v44 }
 0xfb9   :  { %v1694_v50 = vmul.f32 %v1692_v46, %v1691_v39 }
 0xfba   :  { %v1674_v12 = vsub.f32 1.5, %v1673_v28 }
 0xfbb   :  { %v1697_v53 = vadd.f32 %v1695_v42, %v1694_v50 }
 0xfbc   :  { %v1675_v45 = vmul.f32 %v2020_v33, %v1674_v12 }
 0xfbd   :  { %v1699_v58 = vrot.slane %v1697_v53, 7 }
 0xfbe   :  { %v1679_v48 = vsel %vm1678_vm9, %v2020_v33, %v1675_v45 }
 0xfbf   :  { %v1690_v52 = vmul.f32 %v1679_v48, %v1666_v47 }
 0xfc1   :  { %v1693_v56 = vmul.f32 %v1692_v46, %v1690_v52 }
 0xfc3   :  { %v1696_v24 = vadd.f32 %v1695_v42, %v1693_v56 }
 0xfc5   :  { %v1702_v59 = vsel %vm1701_vm10, %v1696_v24, %v1699_v58 }
 0xfc6   :  { %1861 = vmatmul.msk.f32.vlgmr.msra.gmra.mxu2 %vm85_vm3, %v1702_v59 }
0x1049   :  { %v1732_v2 = vpop.f32.mrf.mxu2 }
0x104a   :  { %v1733_v4 = vadd.f32 %v1732_v2, %v1711_v43 }
0x104c   :  { %2021 = vtanh.f32 %v1733_v4 }
0x1052   :  { %v2022_v5 = vpop.eup %2021 }
0x1053   :  { %1862 = vmatmul.msk.f32.vlgmr.msra.gmra.mxu3 %vm85_vm3, %v2022_v5 }
0x10d6   :  { %v1757_v10 = vpop.f32.mrf.mxu3 }
0x10d7   :  { %v1758_v41 = vadd.f32 %v1757_v10, %v1736_v7 }
0x10d9   :  { %v1760_v49 = vmax.f32 %v1758_v41, 0.0 }
0x10db   :  { %1761 = vst [vmem:[#allocation2] sm:$0x3] %v1760_v49 }
0x10dc   :  { %1772 = dma.vmem_to_hbm [thread:$0]  %s1768_s13, 32, %s1770_s6, [#allocation3]  }
0x10dd   :  { %2051 = dma.done.wait [#allocation3], 32  }
0x10de   :  { %2052 = vsyncadd [#allocation3], 4294967264 }
0x10df   :  { %1777 = vsyncpa [#allocation3], 1 }

</bundles_post_ra>
